<compile_context>
chip_gen: v6e
topology: v6e:2x2x1
jax: 0.10.0
libtpu: 0.0.40
codegen_flags: <defaults>
</compile_context>

<pallas_src>
import functools

import jax
import jax.numpy as jnp
import numpy as np
from jax import lax
from jax.experimental import pallas as pl
from jax.experimental.pallas import tpu as pltpu


# ----------------------------------------------------------------------------
# Kernel
# ----------------------------------------------------------------------------
def _layer_norm(x, gamma, beta, eps):
    # x: (R, D); gamma/beta: (1, D)
    mean = jnp.mean(x, axis=-1, keepdims=True)
    xc = x - mean
    var = jnp.mean(xc * xc, axis=-1, keepdims=True)
    return xc * lax.rsqrt(var + eps) * gamma + beta


def _encoder_stack_kernel(x_ref, wqkv_ref, bqkv_ref, wo_ref, bo_ref,
                          g1_ref, be1_ref, wf1_ref, bf1_ref,
                          wf2_ref, bf2_ref, g2_ref, be2_ref,
                          o_ref, act_ref, *, num_heads, eps):
    """One grid step == one TransformerEncoderLayer applied in place."""
    layer = pl.program_id(0)
    B, S, D = x_ref.shape
    BS = B * S
    head_dim = D // num_heads
    scale = 1.0 / float(np.sqrt(head_dim))

    # Load the input activations into the resident VMEM carry on step 0 only.
    @pl.when(layer == 0)
    def _():
        act_ref[...] = x_ref[...].reshape(BS, D)

    x2 = act_ref[...]                                             # (B*S, D) f32

    # ---------------- self-attention ----------------
    # Fused QKV projection: batch folded into MXU rows, weight pre-transposed.
    qkv = jnp.dot(x2, wqkv_ref[0],
                  preferred_element_type=jnp.float32) + bqkv_ref[0]   # (B*S, 3D)

    ctx_heads = []
    for h in range(num_heads):                      # static unroll, H small
        lo = h * head_dim
        q_h = qkv[:, lo:lo + head_dim].reshape(B, S, head_dim)
        k_h = qkv[:, D + lo:D + lo + head_dim].reshape(B, S, head_dim)
        v_h = qkv[:, 2 * D + lo:2 * D + lo + head_dim].reshape(B, S, head_dim)

        # scores via dot_general (contraction on last dims, no explicit k.T)
        s = jnp.einsum("bqd,bkd->bqk", q_h, k_h,
                       preferred_element_type=jnp.float32) * scale    # (B,S,S)
        s = s - jnp.max(s, axis=-1, keepdims=True)
        p = jnp.exp(s)
        p = p / jnp.sum(p, axis=-1, keepdims=True)
        ctx_heads.append(jnp.einsum("bqk,bkd->bqd", p, v_h,
                                    preferred_element_type=jnp.float32))

    ctx = jnp.concatenate(ctx_heads, axis=-1).reshape(BS, D)          # (B*S, D)

    attn = jnp.dot(ctx, wo_ref[0],
                   preferred_element_type=jnp.float32) + bo_ref[0]

    # residual + LayerNorm1  (dropout == identity in eval mode)
    y = _layer_norm(x2 + attn, g1_ref[0], be1_ref[0], eps)

    # ---------------- feed-forward ----------------
    h1 = jnp.dot(y, wf1_ref[0],
                 preferred_element_type=jnp.float32) + bf1_ref[0]     # (B*S, F)
    h1 = jnp.maximum(h1, 0.0)                                         # relu
    ff = jnp.dot(h1, wf2_ref[0],
                 preferred_element_type=jnp.float32) + bf2_ref[0]     # (B*S, D)

    z = _layer_norm(y + ff, g2_ref[0], be2_ref[0], eps)

    # carry to next layer
    act_ref[...] = z

    # finalize: write HBM output once, lane-dense (last dim == D == 128)
    @pl.when(layer == pl.num_programs(0) - 1)
    def _():
        o_ref[...] = z.reshape(B, S, D)


# ----------------------------------------------------------------------------
# Wrapper
# ----------------------------------------------------------------------------
def particle_encoder(x, packed, *, num_heads, eps=1e-5):
    """x: (B, S, D) f32; packed: dict of layer-stacked, pre-transposed weights."""
    B, S, D = x.shape
    L = packed["w_qkv_t"].shape[0]

    kernel = functools.partial(_encoder_stack_kernel,
                               num_heads=num_heads, eps=eps)

    def per_layer_spec(arr):
        # block = one layer's slab of the stacked array; indexed by grid step l
        block = (1,) + arr.shape[1:]
        return pl.BlockSpec(block, lambda l: (l, 0, 0))

    in_specs = [
        pl.BlockSpec((B, S, D), lambda l: (0, 0, 0)),     # x (same block each step)
        per_layer_spec(packed["w_qkv_t"]),
        per_layer_spec(packed["b_qkv"]),
        per_layer_spec(packed["w_out_t"]),
        per_layer_spec(packed["b_out"]),
        per_layer_spec(packed["ln1_w"]),
        per_layer_spec(packed["ln1_b"]),
        per_layer_spec(packed["w_ff1_t"]),
        per_layer_spec(packed["b_ff1"]),
        per_layer_spec(packed["w_ff2_t"]),
        per_layer_spec(packed["b_ff2"]),
        per_layer_spec(packed["ln2_w"]),
        per_layer_spec(packed["ln2_b"]),
    ]

    return pl.pallas_call(
        kernel,
        out_shape=jax.ShapeDtypeStruct((B, S, D), jnp.float32),
        grid_spec=pltpu.PrefetchScalarGridSpec(
            num_scalar_prefetch=0,
            grid=(L,),                       # sequential over layers
            in_specs=in_specs,
            out_specs=pl.BlockSpec((B, S, D), lambda l: (0, 0, 0)),
            scratch_shapes=[pltpu.VMEM((B * S, D), jnp.float32)],   # activation carry
        ),
        compiler_params=pltpu.CompilerParams(
            dimension_semantics=("arbitrary",),   # layer-to-layer dependency
        ),
    )(
        x,
        packed["w_qkv_t"], packed["b_qkv"],
        packed["w_out_t"], packed["b_out"],
        packed["ln1_w"], packed["ln1_b"],
        packed["w_ff1_t"], packed["b_ff1"],
        packed["w_ff2_t"], packed["b_ff2"],
        packed["ln2_w"], packed["ln2_b"],
    )


# ----------------------------------------------------------------------------
# Parameter construction (torch-layout) and packing (kernel-layout, hoisted)
# ----------------------------------------------------------------------------
def init_layer_params(key, d_model, dff):
    """PyTorch-layout parameters for one nn.TransformerEncoderLayer."""
    ks = jax.random.split(key, 12)
    s_d = 1.0 / np.sqrt(d_model)
    s_f = 1.0 / np.sqrt(dff)
    return dict(
        in_proj_weight=jax.random.normal(ks[0], (3 * d_model, d_model), jnp.float32) * s_d,
        in_proj_bias=jax.random.normal(ks[1], (3 * d_model,), jnp.float32) * 0.02,
        out_proj_weight=jax.random.normal(ks[2], (d_model, d_model), jnp.float32) * s_d,
        out_proj_bias=jax.random.normal(ks[3], (d_model,), jnp.float32) * 0.02,
        ln1_w=1.0 + 0.05 * jax.random.normal(ks[4], (d_model,), jnp.float32),
        ln1_b=0.05 * jax.random.normal(ks[5], (d_model,), jnp.float32),
        lin1_w=jax.random.normal(ks[6], (dff, d_model), jnp.float32) * s_d,
        lin1_b=jax.random.normal(ks[7], (dff,), jnp.float32) * 0.02,
        lin2_w=jax.random.normal(ks[8], (d_model, dff), jnp.float32) * s_f,
        lin2_b=jax.random.normal(ks[9], (d_model,), jnp.float32) * 0.02,
        ln2_w=1.0 + 0.05 * jax.random.normal(ks[10], (d_model,), jnp.float32),
        ln2_b=0.05 * jax.random.normal(ks[11], (d_model,), jnp.float32),
    )


def pack_layers_for_kernel(layers):
    """Hoist all grid-invariant layout work: transpose weights, reshape biases,
    and stack along a leading layer axis so the kernel streams one layer/step."""
    def stack(fn):
        return jnp.stack([fn(p) for p in layers], axis=0)
    return dict(
        w_qkv_t=stack(lambda p: p["in_proj_weight"].T),        # (L, D, 3D)
        b_qkv=stack(lambda p: p["in_proj_bias"][None, :]),     # (L, 1, 3D)
        w_out_t=stack(lambda p: p["out_proj_weight"].T),       # (L, D, D)
        b_out=stack(lambda p: p["out_proj_bias"][None, :]),    # (L, 1, D)
        ln1_w=stack(lambda p: p["ln1_w"][None, :]),            # (L, 1, D)
        ln1_b=stack(lambda p: p["ln1_b"][None, :]),
        w_ff1_t=stack(lambda p: p["lin1_w"].T),                # (L, D, F)
        b_ff1=stack(lambda p: p["lin1_b"][None, :]),           # (L, 1, F)
        w_ff2_t=stack(lambda p: p["lin2_w"].T),                # (L, F, D)
        b_ff2=stack(lambda p: p["lin2_b"][None, :]),           # (L, 1, D)
        ln2_w=stack(lambda p: p["ln2_w"][None, :]),
        ln2_b=stack(lambda p: p["ln2_b"][None, :]),
    )


# ----------------------------------------------------------------------------
# Pure-JAX reference (matches PyTorch eval-mode forward)
# ----------------------------------------------------------------------------
def _layer_norm_ref(x, w, b, eps):
    mean = jnp.mean(x, axis=-1, keepdims=True)
    xc = x - mean
    var = jnp.mean(xc * xc, axis=-1, keepdims=True)
    return xc * lax.rsqrt(var + eps) * w + b


def particle_encoder_ref(x, layers, *, num_heads, eps=1e-5):
    HI = lax.Precision.HIGHEST
    B, S, D = x.shape
    hd = D // num_heads
    h = x
    for p in layers:
        qkv = jnp.einsum("bsd,ed->bse", h, p["in_proj_weight"],
                         precision=HI) + p["in_proj_bias"]
        q, k, v = jnp.split(qkv, 3, axis=-1)

        def split_heads(t):
            return t.reshape(B, S, num_heads, hd).transpose(0, 2, 1, 3)

        q, k, v = split_heads(q), split_heads(k), split_heads(v)
        s = jnp.einsum("bhqd,bhkd->bhqk", q, k, precision=HI) / np.sqrt(hd)
        a = jax.nn.softmax(s, axis=-1)
        ctx = jnp.einsum("bhqk,bhkd->bhqd", a, v, precision=HI)
        ctx = ctx.transpose(0, 2, 1, 3).reshape(B, S, D)
        attn = jnp.einsum("bsd,ed->bse", ctx, p["out_proj_weight"],
                          precision=HI) + p["out_proj_bias"]
        y = _layer_norm_ref(h + attn, p["ln1_w"], p["ln1_b"], eps)
        h1 = jax.nn.relu(jnp.einsum("bsd,fd->bsf", y, p["lin1_w"],
                                    precision=HI) + p["lin1_b"])
        ff = jnp.einsum("bsf,df->bsd", h1, p["lin2_w"],
                        precision=HI) + p["lin2_b"]
        h = _layer_norm_ref(y + ff, p["ln2_w"], p["ln2_b"], eps)
    return h


# ----------------------------------------------------------------------------
# Self-test
# ----------------------------------------------------------------------------
if __name__ == "__main__":
    # options_file-equivalent hyperparameters (small, lane-aligned).
    B, S = 2, 8               # batch, sequence
    D = 128                   # model_dim (lane-dense on TPU)
    NUM_HEADS = 4             # num_of_particle_attention_heads
    DFF = 256                 # feed-forward dim
    NUM_ENCODERS = 2          # num_of_particle_encoders
    LAYERS_PER_ENCODER = 2    # num_of_particle_encoder_layers
    TOTAL_LAYERS = NUM_ENCODERS * LAYERS_PER_ENCODER

    key = jax.random.PRNGKey(0)
    k_x, k_w = jax.random.split(key)

    x = jax.random.normal(k_x, (B, S, D), dtype=jnp.float32)
    layer_keys = jax.random.split(k_w, TOTAL_LAYERS)
    layers = [init_layer_params(k, D, DFF) for k in layer_keys]
    packed = pack_layers_for_kernel(layers)

    out = particle_encoder(x, packed, num_heads=NUM_HEADS)
    out = jax.block_until_ready(out)

    ref = particle_encoder_ref(x, layers, num_heads=NUM_HEADS)
    np.testing.assert_allclose(np.asarray(out), np.asarray(ref),
                               rtol=1e-3, atol=1e-3)

    print("KERNEL_OK")
</pallas_src>

<mosaic_0001>
module attributes {stable_mosaic.version = 11 : i64} {
  func.func @_encoder_stack_kernel(%arg0: i32, %arg1: memref<2x8x128xf32, #tpu.memory_space<vmem>>, %arg2: memref<1x128x384xf32, #tpu.memory_space<vmem>>, %arg3: memref<1x1x384xf32, #tpu.memory_space<vmem>>, %arg4: memref<1x128x128xf32, #tpu.memory_space<vmem>>, %arg5: memref<1x1x128xf32, #tpu.memory_space<vmem>>, %arg6: memref<1x1x128xf32, #tpu.memory_space<vmem>>, %arg7: memref<1x1x128xf32, #tpu.memory_space<vmem>>, %arg8: memref<1x128x256xf32, #tpu.memory_space<vmem>>, %arg9: memref<1x1x256xf32, #tpu.memory_space<vmem>>, %arg10: memref<1x256x128xf32, #tpu.memory_space<vmem>>, %arg11: memref<1x1x128xf32, #tpu.memory_space<vmem>>, %arg12: memref<1x1x128xf32, #tpu.memory_space<vmem>>, %arg13: memref<1x1x128xf32, #tpu.memory_space<vmem>>, %arg14: memref<2x8x128xf32, #tpu.memory_space<vmem>>, %arg15: memref<16x128xf32, #tpu.memory_space<vmem>>) attributes {dimension_semantics = [#tpu.dimension_semantics<arbitrary>], iteration_bounds = array<i64: 4>, scalar_prefetch = 0 : i64, scratch_operands = 1 : i64, tpu.core_type = #tpu.core_type<tc>, window_params = [{pipeline_mode = #tpu.pipeline_mode<synchronous>, transform_indices = @transform_0, window_bounds = array<i64: 2, 8, 128>}, {transform_indices = @transform_1, window_bounds = array<i64: 1, 128, 384>}, {transform_indices = @transform_2, window_bounds = array<i64: 1, 1, 384>}, {transform_indices = @transform_3, window_bounds = array<i64: 1, 128, 128>}, {transform_indices = @transform_4, window_bounds = array<i64: 1, 1, 128>}, {transform_indices = @transform_5, window_bounds = array<i64: 1, 1, 128>}, {transform_indices = @transform_6, window_bounds = array<i64: 1, 1, 128>}, {transform_indices = @transform_7, window_bounds = array<i64: 1, 128, 256>}, {transform_indices = @transform_8, window_bounds = array<i64: 1, 1, 256>}, {transform_indices = @transform_9, window_bounds = array<i64: 1, 256, 128>}, {transform_indices = @transform_10, window_bounds = array<i64: 1, 1, 128>}, {transform_indices = @transform_11, window_bounds = array<i64: 1, 1, 128>}, {transform_indices = @transform_12, window_bounds = array<i64: 1, 1, 128>}, {pipeline_mode = #tpu.pipeline_mode<synchronous>, transform_indices = @transform_13, window_bounds = array<i64: 2, 8, 128>}]} {
    %c0_i32 = arith.constant 0 : i32
    %0 = arith.cmpi eq, %arg0, %c0_i32 : i32
    %1 = arith.extui %0 : i1 to i32
    %c0_i32_0 = arith.constant 0 : i32
    %2 = arith.cmpi ne, %1, %c0_i32_0 : i32
    scf.if %2 {
      %c0_75 = arith.constant 0 : index
      %c0_76 = arith.constant 0 : index
      %c0_77 = arith.constant 0 : index
      %166 = vector.load %arg1[%c0_75, %c0_76, %c0_77] : memref<2x8x128xf32, #tpu.memory_space<vmem>>, vector<2x8x128xf32>
      %167 = vector.shape_cast %166 : vector<2x8x128xf32> to vector<16x128xf32>
      %c0_78 = arith.constant 0 : index
      %c0_79 = arith.constant 0 : index
      %168 = vector.load %arg15[%c0_78, %c0_79] : memref<16x128xf32, #tpu.memory_space<vmem>>, vector<16x128xf32>
      tpu.vector_store %arg15[%c0_78, %c0_79], %167 {strides = array<i32>} : memref<16x128xf32, #tpu.memory_space<vmem>>, vector<16x128xf32>,
    } else {
    }
    %c0 = arith.constant 0 : index
    %c0_1 = arith.constant 0 : index
    %3 = vector.load %arg15[%c0, %c0_1] : memref<16x128xf32, #tpu.memory_space<vmem>>, vector<16x128xf32>
    %c0_2 = arith.constant 0 : index
    %c0_3 = arith.constant 0 : index
    %c0_4 = arith.constant 0 : index
    %4 = vector.load %arg2[%c0_2, %c0_3, %c0_4] : memref<1x128x384xf32, #tpu.memory_space<vmem>>, vector<1x128x384xf32>
    %5 = vector.shape_cast %4 : vector<1x128x384xf32> to vector<128x384xf32>
    %cst = arith.constant dense<0.000000e+00> : vector<16x384xf32>
    %6 = tpu.matmul %3, %5, %cst {dimension_numbers = #tpu.dot_dimension_numbers<[1], [0], [0], [1], [0, 0, 1, 1], [], []>} : vector<16x128xf32>, vector<128x384xf32>, vector<16x384xf32> -> vector<16x384xf32>
    %c0_5 = arith.constant 0 : index
    %c0_6 = arith.constant 0 : index
    %c0_7 = arith.constant 0 : index
    %7 = vector.load %arg3[%c0_5, %c0_6, %c0_7] : memref<1x1x384xf32, #tpu.memory_space<vmem>>, vector<1x1x384xf32>
    %8 = vector.shape_cast %7 : vector<1x1x384xf32> to vector<1x384xf32>
    %9 = vector.broadcast %8 : vector<1x384xf32> to vector<16x384xf32>
    %10 = arith.addf %6, %9 : vector<16x384xf32>
    %11 = vector.extract_strided_slice %10 {offsets = [0, 0], sizes = [16, 32], strides = [1, 1]} : vector<16x384xf32> to vector<16x32xf32>
    %12 = vector.shape_cast %11 : vector<16x32xf32> to vector<2x8x32xf32>
    %13 = vector.extract_strided_slice %10 {offsets = [0, 128], sizes = [16, 32], strides = [1, 1]} : vector<16x384xf32> to vector<16x32xf32>
    %14 = vector.shape_cast %13 : vector<16x32xf32> to vector<2x8x32xf32>
    %15 = vector.extract_strided_slice %10 {offsets = [0, 256], sizes = [16, 32], strides = [1, 1]} : vector<16x384xf32> to vector<16x32xf32>
    %16 = vector.shape_cast %15 : vector<16x32xf32> to vector<2x8x32xf32>
    "tpu.trace_start"() <{level = 10 : i32, message = "bqd,bkd->bqk"}> : () -> ()
    %cst_8 = arith.constant dense<0.000000e+00> : vector<2x8x8xf32>
    %17 = tpu.matmul %12, %14, %cst_8 {dimension_numbers = #tpu.dot_dimension_numbers<[2], [2], [1], [1], [0, 0, 0, 1, 1, 1], [0], [0]>} : vector<2x8x32xf32>, vector<2x8x32xf32>, vector<2x8x8xf32> -> vector<2x8x8xf32>
    "tpu.trace_stop"() : () -> ()
    %cst_9 = arith.constant 0.176776692 : f32
    %18 = vector.broadcast %cst_9 : f32 to vector<2x8x8xf32>
    %19 = arith.mulf %17, %18 : vector<2x8x8xf32>
    %cst_10 = arith.constant dense<0xFF800000> : vector<2x8xf32>
    %20 = vector.multi_reduction <maximumf>, %19, %cst_10 [2] : vector<2x8x8xf32> to vector<2x8xf32>
    %21 = vector.shape_cast %20 : vector<2x8xf32> to vector<2x8x1xf32>
    %22 = vector.broadcast %21 : vector<2x8x1xf32> to vector<2x8x8xf32>
    %23 = arith.subf %19, %22 : vector<2x8x8xf32>
    %24 = math.exp %23 : vector<2x8x8xf32>
    %cst_11 = arith.constant dense<0.000000e+00> : vector<2x8xf32>
    %25 = vector.multi_reduction <add>, %24, %cst_11 [2] : vector<2x8x8xf32> to vector<2x8xf32>
    %26 = vector.shape_cast %25 : vector<2x8xf32> to vector<2x8x1xf32>
    %27 = vector.broadcast %26 : vector<2x8x1xf32> to vector<2x8x8xf32>
    %28 = arith.divf %24, %27 : vector<2x8x8xf32>
    "tpu.trace_start"() <{level = 10 : i32, message = "bqk,bkd->bqd"}> : () -> ()
    %cst_12 = arith.constant dense<0.000000e+00> : vector<2x8x32xf32>
    %29 = tpu.matmul %28, %16, %cst_12 {dimension_numbers = #tpu.dot_dimension_numbers<[2], [1], [1], [2], [0, 0, 0, 1, 1, 2], [0], [0]>} : vector<2x8x8xf32>, vector<2x8x32xf32>, vector<2x8x32xf32> -> vector<2x8x32xf32>
    "tpu.trace_stop"() : () -> ()
    %30 = vector.extract_strided_slice %10 {offsets = [0, 32], sizes = [16, 32], strides = [1, 1]} : vector<16x384xf32> to vector<16x32xf32>
    %31 = vector.shape_cast %30 : vector<16x32xf32> to vector<2x8x32xf32>
    %32 = vector.extract_strided_slice %10 {offsets = [0, 160], sizes = [16, 32], strides = [1, 1]} : vector<16x384xf32> to vector<16x32xf32>
    %33 = vector.shape_cast %32 : vector<16x32xf32> to vector<2x8x32xf32>
    %34 = vector.extract_strided_slice %10 {offsets = [0, 288], sizes = [16, 32], strides = [1, 1]} : vector<16x384xf32> to vector<16x32xf32>
    %35 = vector.shape_cast %34 : vector<16x32xf32> to vector<2x8x32xf32>
    "tpu.trace_start"() <{level = 10 : i32, message = "bqd,bkd->bqk"}> : () -> ()
    %cst_13 = arith.constant dense<0.000000e+00> : vector<2x8x8xf32>
    %36 = tpu.matmul %31, %33, %cst_13 {dimension_numbers = #tpu.dot_dimension_numbers<[2], [2], [1], [1], [0, 0, 0, 1, 1, 1], [0], [0]>} : vector<2x8x32xf32>, vector<2x8x32xf32>, vector<2x8x8xf32> -> vector<2x8x8xf32>
    "tpu.trace_stop"() : () -> ()
    %cst_14 = arith.constant 0.176776692 : f32
    %37 = vector.broadcast %cst_14 : f32 to vector<2x8x8xf32>
    %38 = arith.mulf %36, %37 : vector<2x8x8xf32>
    %cst_15 = arith.constant dense<0xFF800000> : vector<2x8xf32>
    %39 = vector.multi_reduction <maximumf>, %38, %cst_15 [2] : vector<2x8x8xf32> to vector<2x8xf32>
    %40 = vector.shape_cast %39 : vector<2x8xf32> to vector<2x8x1xf32>
    %41 = vector.broadcast %40 : vector<2x8x1xf32> to vector<2x8x8xf32>
    %42 = arith.subf %38, %41 : vector<2x8x8xf32>
    %43 = math.exp %42 : vector<2x8x8xf32>
    %cst_16 = arith.constant dense<0.000000e+00> : vector<2x8xf32>
    %44 = vector.multi_reduction <add>, %43, %cst_16 [2] : vector<2x8x8xf32> to vector<2x8xf32>
    %45 = vector.shape_cast %44 : vector<2x8xf32> to vector<2x8x1xf32>
    %46 = vector.broadcast %45 : vector<2x8x1xf32> to vector<2x8x8xf32>
    %47 = arith.divf %43, %46 : vector<2x8x8xf32>
    "tpu.trace_start"() <{level = 10 : i32, message = "bqk,bkd->bqd"}> : () -> ()
    %cst_17 = arith.constant dense<0.000000e+00> : vector<2x8x32xf32>
    %48 = tpu.matmul %47, %35, %cst_17 {dimension_numbers = #tpu.dot_dimension_numbers<[2], [1], [1], [2], [0, 0, 0, 1, 1, 2], [0], [0]>} : vector<2x8x8xf32>, vector<2x8x32xf32>, vector<2x8x32xf32> -> vector<2x8x32xf32>
    "tpu.trace_stop"() : () -> ()
    %49 = vector.extract_strided_slice %10 {offsets = [0, 64], sizes = [16, 32], strides = [1, 1]} : vector<16x384xf32> to vector<16x32xf32>
    %50 = vector.shape_cast %49 : vector<16x32xf32> to vector<2x8x32xf32>
    %51 = vector.extract_strided_slice %10 {offsets = [0, 192], sizes = [16, 32], strides = [1, 1]} : vector<16x384xf32> to vector<16x32xf32>
    %52 = vector.shape_cast %51 : vector<16x32xf32> to vector<2x8x32xf32>
    %53 = vector.extract_strided_slice %10 {offsets = [0, 320], sizes = [16, 32], strides = [1, 1]} : vector<16x384xf32> to vector<16x32xf32>
    %54 = vector.shape_cast %53 : vector<16x32xf32> to vector<2x8x32xf32>
    "tpu.trace_start"() <{level = 10 : i32, message = "bqd,bkd->bqk"}> : () -> ()
    %cst_18 = arith.constant dense<0.000000e+00> : vector<2x8x8xf32>
    %55 = tpu.matmul %50, %52, %cst_18 {dimension_numbers = #tpu.dot_dimension_numbers<[2], [2], [1], [1], [0, 0, 0, 1, 1, 1], [0], [0]>} : vector<2x8x32xf32>, vector<2x8x32xf32>, vector<2x8x8xf32> -> vector<2x8x8xf32>
    "tpu.trace_stop"() : () -> ()
    %cst_19 = arith.constant 0.176776692 : f32
    %56 = vector.broadcast %cst_19 : f32 to vector<2x8x8xf32>
    %57 = arith.mulf %55, %56 : vector<2x8x8xf32>
    %cst_20 = arith.constant dense<0xFF800000> : vector<2x8xf32>
    %58 = vector.multi_reduction <maximumf>, %57, %cst_20 [2] : vector<2x8x8xf32> to vector<2x8xf32>
    %59 = vector.shape_cast %58 : vector<2x8xf32> to vector<2x8x1xf32>
    %60 = vector.broadcast %59 : vector<2x8x1xf32> to vector<2x8x8xf32>
    %61 = arith.subf %57, %60 : vector<2x8x8xf32>
    %62 = math.exp %61 : vector<2x8x8xf32>
    %cst_21 = arith.constant dense<0.000000e+00> : vector<2x8xf32>
    %63 = vector.multi_reduction <add>, %62, %cst_21 [2] : vector<2x8x8xf32> to vector<2x8xf32>
    %64 = vector.shape_cast %63 : vector<2x8xf32> to vector<2x8x1xf32>
    %65 = vector.broadcast %64 : vector<2x8x1xf32> to vector<2x8x8xf32>
    %66 = arith.divf %62, %65 : vector<2x8x8xf32>
    "tpu.trace_start"() <{level = 10 : i32, message = "bqk,bkd->bqd"}> : () -> ()
    %cst_22 = arith.constant dense<0.000000e+00> : vector<2x8x32xf32>
    %67 = tpu.matmul %66, %54, %cst_22 {dimension_numbers = #tpu.dot_dimension_numbers<[2], [1], [1], [2], [0, 0, 0, 1, 1, 2], [0], [0]>} : vector<2x8x8xf32>, vector<2x8x32xf32>, vector<2x8x32xf32> -> vector<2x8x32xf32>
    "tpu.trace_stop"() : () -> ()
    %68 = vector.extract_strided_slice %10 {offsets = [0, 96], sizes = [16, 32], strides = [1, 1]} : vector<16x384xf32> to vector<16x32xf32>
    %69 = vector.shape_cast %68 : vector<16x32xf32> to vector<2x8x32xf32>
    %70 = vector.extract_strided_slice %10 {offsets = [0, 224], sizes = [16, 32], strides = [1, 1]} : vector<16x384xf32> to vector<16x32xf32>
    %71 = vector.shape_cast %70 : vector<16x32xf32> to vector<2x8x32xf32>
    %72 = vector.extract_strided_slice %10 {offsets = [0, 352], sizes = [16, 32], strides = [1, 1]} : vector<16x384xf32> to vector<16x32xf32>
    %73 = vector.shape_cast %72 : vector<16x32xf32> to vector<2x8x32xf32>
    "tpu.trace_start"() <{level = 10 : i32, message = "bqd,bkd->bqk"}> : () -> ()
    %cst_23 = arith.constant dense<0.000000e+00> : vector<2x8x8xf32>
    %74 = tpu.matmul %69, %71, %cst_23 {dimension_numbers = #tpu.dot_dimension_numbers<[2], [2], [1], [1], [0, 0, 0, 1, 1, 1], [0], [0]>} : vector<2x8x32xf32>, vector<2x8x32xf32>, vector<2x8x8xf32> -> vector<2x8x8xf32>
    "tpu.trace_stop"() : () -> ()
    %cst_24 = arith.constant 0.176776692 : f32
    %75 = vector.broadcast %cst_24 : f32 to vector<2x8x8xf32>
    %76 = arith.mulf %74, %75 : vector<2x8x8xf32>
    %cst_25 = arith.constant dense<0xFF800000> : vector<2x8xf32>
    %77 = vector.multi_reduction <maximumf>, %76, %cst_25 [2] : vector<2x8x8xf32> to vector<2x8xf32>
    %78 = vector.shape_cast %77 : vector<2x8xf32> to vector<2x8x1xf32>
    %79 = vector.broadcast %78 : vector<2x8x1xf32> to vector<2x8x8xf32>
    %80 = arith.subf %76, %79 : vector<2x8x8xf32>
    %81 = math.exp %80 : vector<2x8x8xf32>
    %cst_26 = arith.constant dense<0.000000e+00> : vector<2x8xf32>
    %82 = vector.multi_reduction <add>, %81, %cst_26 [2] : vector<2x8x8xf32> to vector<2x8xf32>
    %83 = vector.shape_cast %82 : vector<2x8xf32> to vector<2x8x1xf32>
    %84 = vector.broadcast %83 : vector<2x8x1xf32> to vector<2x8x8xf32>
    %85 = arith.divf %81, %84 : vector<2x8x8xf32>
    "tpu.trace_start"() <{level = 10 : i32, message = "bqk,bkd->bqd"}> : () -> ()
    %cst_27 = arith.constant dense<0.000000e+00> : vector<2x8x32xf32>
    %86 = tpu.matmul %85, %73, %cst_27 {dimension_numbers = #tpu.dot_dimension_numbers<[2], [1], [1], [2], [0, 0, 0, 1, 1, 2], [0], [0]>} : vector<2x8x8xf32>, vector<2x8x32xf32>, vector<2x8x32xf32> -> vector<2x8x32xf32>
    "tpu.trace_stop"() : () -> ()
    %87 = tpu.concatenate %29, %48, %67, %86 in 2 : vector<2x8x32xf32>, vector<2x8x32xf32>, vector<2x8x32xf32>, vector<2x8x32xf32> -> vector<2x8x128xf32>
    %88 = vector.shape_cast %87 : vector<2x8x128xf32> to vector<16x128xf32>
    %c0_28 = arith.constant 0 : index
    %c0_29 = arith.constant 0 : index
    %c0_30 = arith.constant 0 : index
    %89 = vector.load %arg4[%c0_28, %c0_29, %c0_30] : memref<1x128x128xf32, #tpu.memory_space<vmem>>, vector<1x128x128xf32>
    %90 = vector.shape_cast %89 : vector<1x128x128xf32> to vector<128x128xf32>
    %cst_31 = arith.constant dense<0.000000e+00> : vector<16x128xf32>
    %91 = tpu.matmul %88, %90, %cst_31 {dimension_numbers = #tpu.dot_dimension_numbers<[1], [0], [0], [1], [0, 0, 1, 1], [], []>} : vector<16x128xf32>, vector<128x128xf32>, vector<16x128xf32> -> vector<16x128xf32>
    %c0_32 = arith.constant 0 : index
    %c0_33 = arith.constant 0 : index
    %c0_34 = arith.constant 0 : index
    %92 = vector.load %arg5[%c0_32, %c0_33, %c0_34] : memref<1x1x128xf32, #tpu.memory_space<vmem>>, vector<1x1x128xf32>
    %93 = vector.shape_cast %92 : vector<1x1x128xf32> to vector<1x128xf32>
    %94 = vector.broadcast %93 : vector<1x128xf32> to vector<16x128xf32>
    %95 = arith.addf %91, %94 : vector<16x128xf32>
    %96 = arith.addf %3, %95 : vector<16x128xf32>
    %c0_35 = arith.constant 0 : index
    %c0_36 = arith.constant 0 : index
    %c0_37 = arith.constant 0 : index
    %97 = vector.load %arg6[%c0_35, %c0_36, %c0_37] : memref<1x1x128xf32, #tpu.memory_space<vmem>>, vector<1x1x128xf32>
    %98 = vector.shape_cast %97 : vector<1x1x128xf32> to vector<1x128xf32>
    %c0_38 = arith.constant 0 : index
    %c0_39 = arith.constant 0 : index
    %c0_40 = arith.constant 0 : index
    %99 = vector.load %arg7[%c0_38, %c0_39, %c0_40] : memref<1x1x128xf32, #tpu.memory_space<vmem>>, vector<1x1x128xf32>
    %100 = vector.shape_cast %99 : vector<1x1x128xf32> to vector<1x128xf32>
    %cst_41 = arith.constant dense<0.000000e+00> : vector<16xf32>
    %101 = vector.multi_reduction <add>, %96, %cst_41 [1] : vector<16x128xf32> to vector<16xf32>
    %102 = vector.shape_cast %101 : vector<16xf32> to vector<16x1xf32>
    %cst_42 = arith.constant 1.280000e+02 : f32
    %103 = vector.broadcast %cst_42 : f32 to vector<16x1xf32>
    %104 = arith.divf %102, %103 : vector<16x1xf32>
    %105 = vector.broadcast %104 : vector<16x1xf32> to vector<16x128xf32>
    %106 = arith.subf %96, %105 : vector<16x128xf32>
    %107 = arith.mulf %106, %106 : vector<16x128xf32>
    %cst_43 = arith.constant dense<0.000000e+00> : vector<16xf32>
    %108 = vector.multi_reduction <add>, %107, %cst_43 [1] : vector<16x128xf32> to vector<16xf32>
    %109 = vector.shape_cast %108 : vector<16xf32> to vector<16x1xf32>
    %cst_44 = arith.constant 1.280000e+02 : f32
    %110 = vector.broadcast %cst_44 : f32 to vector<16x1xf32>
    %111 = arith.divf %109, %110 : vector<16x1xf32>
    %cst_45 = arith.constant 9.99999974E-6 : f32
    %112 = vector.broadcast %cst_45 : f32 to vector<16x1xf32>
    %113 = arith.addf %111, %112 : vector<16x1xf32>
    %114 = math.rsqrt %113 : vector<16x1xf32>
    %115 = vector.broadcast %114 : vector<16x1xf32> to vector<16x128xf32>
    %116 = arith.mulf %106, %115 : vector<16x128xf32>
    %117 = vector.broadcast %98 : vector<1x128xf32> to vector<16x128xf32>
    %118 = arith.mulf %116, %117 : vector<16x128xf32>
    %119 = vector.broadcast %100 : vector<1x128xf32> to vector<16x128xf32>
    %120 = arith.addf %118, %119 : vector<16x128xf32>
    %c0_46 = arith.constant 0 : index
    %c0_47 = arith.constant 0 : index
    %c0_48 = arith.constant 0 : index
    %121 = vector.load %arg8[%c0_46, %c0_47, %c0_48] : memref<1x128x256xf32, #tpu.memory_space<vmem>>, vector<1x128x256xf32>
    %122 = vector.shape_cast %121 : vector<1x128x256xf32> to vector<128x256xf32>
    %cst_49 = arith.constant dense<0.000000e+00> : vector<16x256xf32>
    %123 = tpu.matmul %120, %122, %cst_49 {dimension_numbers = #tpu.dot_dimension_numbers<[1], [0], [0], [1], [0, 0, 1, 1], [], []>} : vector<16x128xf32>, vector<128x256xf32>, vector<16x256xf32> -> vector<16x256xf32>
    %c0_50 = arith.constant 0 : index
    %c0_51 = arith.constant 0 : index
    %c0_52 = arith.constant 0 : index
    %124 = vector.load %arg9[%c0_50, %c0_51, %c0_52] : memref<1x1x256xf32, #tpu.memory_space<vmem>>, vector<1x1x256xf32>
    %125 = vector.shape_cast %124 : vector<1x1x256xf32> to vector<1x256xf32>
    %126 = vector.broadcast %125 : vector<1x256xf32> to vector<16x256xf32>
    %127 = arith.addf %123, %126 : vector<16x256xf32>
    %cst_53 = arith.constant 0.000000e+00 : f32
    %128 = vector.broadcast %cst_53 : f32 to vector<16x256xf32>
    %129 = arith.maximumf %127, %128 : vector<16x256xf32>
    %c0_54 = arith.constant 0 : index
    %c0_55 = arith.constant 0 : index
    %c0_56 = arith.constant 0 : index
    %130 = vector.load %arg10[%c0_54, %c0_55, %c0_56] : memref<1x256x128xf32, #tpu.memory_space<vmem>>, vector<1x256x128xf32>
    %131 = vector.shape_cast %130 : vector<1x256x128xf32> to vector<256x128xf32>
    %cst_57 = arith.constant dense<0.000000e+00> : vector<16x128xf32>
    %132 = tpu.matmul %129, %131, %cst_57 {dimension_numbers = #tpu.dot_dimension_numbers<[1], [0], [0], [1], [0, 0, 1, 1], [], []>} : vector<16x256xf32>, vector<256x128xf32>, vector<16x128xf32> -> vector<16x128xf32>
    %c0_58 = arith.constant 0 : index
    %c0_59 = arith.constant 0 : index
    %c0_60 = arith.constant 0 : index
    %133 = vector.load %arg11[%c0_58, %c0_59, %c0_60] : memref<1x1x128xf32, #tpu.memory_space<vmem>>, vector<1x1x128xf32>
    %134 = vector.shape_cast %133 : vector<1x1x128xf32> to vector<1x128xf32>
    %135 = vector.broadcast %134 : vector<1x128xf32> to vector<16x128xf32>
    %136 = arith.addf %132, %135 : vector<16x128xf32>
    %137 = arith.addf %120, %136 : vector<16x128xf32>
    %c0_61 = arith.constant 0 : index
    %c0_62 = arith.constant 0 : index
    %c0_63 = arith.constant 0 : index
    %138 = vector.load %arg12[%c0_61, %c0_62, %c0_63] : memref<1x1x128xf32, #tpu.memory_space<vmem>>, vector<1x1x128xf32>
    %139 = vector.shape_cast %138 : vector<1x1x128xf32> to vector<1x128xf32>
    %c0_64 = arith.constant 0 : index
    %c0_65 = arith.constant 0 : index
    %c0_66 = arith.constant 0 : index
    %140 = vector.load %arg13[%c0_64, %c0_65, %c0_66] : memref<1x1x128xf32, #tpu.memory_space<vmem>>, vector<1x1x128xf32>
    %141 = vector.shape_cast %140 : vector<1x1x128xf32> to vector<1x128xf32>
    %cst_67 = arith.constant dense<0.000000e+00> : vector<16xf32>
    %142 = vector.multi_reduction <add>, %137, %cst_67 [1] : vector<16x128xf32> to vector<16xf32>
    %143 = vector.shape_cast %142 : vector<16xf32> to vector<16x1xf32>
    %cst_68 = arith.constant 1.280000e+02 : f32
    %144 = vector.broadcast %cst_68 : f32 to vector<16x1xf32>
    %145 = arith.divf %143, %144 : vector<16x1xf32>
    %146 = vector.broadcast %145 : vector<16x1xf32> to vector<16x128xf32>
    %147 = arith.subf %137, %146 : vector<16x128xf32>
    %148 = arith.mulf %147, %147 : vector<16x128xf32>
    %cst_69 = arith.constant dense<0.000000e+00> : vector<16xf32>
    %149 = vector.multi_reduction <add>, %148, %cst_69 [1] : vector<16x128xf32> to vector<16xf32>
    %150 = vector.shape_cast %149 : vector<16xf32> to vector<16x1xf32>
    %cst_70 = arith.constant 1.280000e+02 : f32
    %151 = vector.broadcast %cst_70 : f32 to vector<16x1xf32>
    %152 = arith.divf %150, %151 : vector<16x1xf32>
    %cst_71 = arith.constant 9.99999974E-6 : f32
    %153 = vector.broadcast %cst_71 : f32 to vector<16x1xf32>
    %154 = arith.addf %152, %153 : vector<16x1xf32>
    %155 = math.rsqrt %154 : vector<16x1xf32>
    %156 = vector.broadcast %155 : vector<16x1xf32> to vector<16x128xf32>
    %157 = arith.mulf %147, %156 : vector<16x128xf32>
    %158 = vector.broadcast %139 : vector<1x128xf32> to vector<16x128xf32>
    %159 = arith.mulf %157, %158 : vector<16x128xf32>
    %160 = vector.broadcast %141 : vector<1x128xf32> to vector<16x128xf32>
    %161 = arith.addf %159, %160 : vector<16x128xf32>
    %c0_72 = arith.constant 0 : index
    %c0_73 = arith.constant 0 : index
    %162 = vector.load %arg15[%c0_72, %c0_73] : memref<16x128xf32, #tpu.memory_space<vmem>>, vector<16x128xf32>
    tpu.vector_store %arg15[%c0_72, %c0_73], %161 {strides = array<i32>} : memref<16x128xf32, #tpu.memory_space<vmem>>, vector<16x128xf32>,
    %c3_i32 = arith.constant 3 : i32
    %163 = arith.cmpi eq, %arg0, %c3_i32 : i32
    %164 = arith.extui %163 : i1 to i32
    %c0_i32_74 = arith.constant 0 : i32
    %165 = arith.cmpi ne, %164, %c0_i32_74 : i32
    scf.if %165 {
      %166 = vector.shape_cast %161 : vector<16x128xf32> to vector<2x8x128xf32>
      %c0_75 = arith.constant 0 : index
      %c0_76 = arith.constant 0 : index
      %c0_77 = arith.constant 0 : index
      %167 = vector.load %arg14[%c0_75, %c0_76, %c0_77] : memref<2x8x128xf32, #tpu.memory_space<vmem>>, vector<2x8x128xf32>
      tpu.vector_store %arg14[%c0_75, %c0_76, %c0_77], %166 {strides = array<i32>} : memref<2x8x128xf32, #tpu.memory_space<vmem>>, vector<2x8x128xf32>,
    } else {
    }
    return
  }
  func.func @transform_0(%arg0: i32) -> (i32, i32, i32) {
    %c0_i32 = arith.constant 0 : i32
    %c0_i32_0 = arith.constant 0 : i32
    %c0_i32_1 = arith.constant 0 : i32
    %c0_i32_2 = arith.constant 0 : i32
    return %c0_i32, %c0_i32_0, %c0_i32_1 : i32, i32, i32
  }
  func.func @transform_1(%arg0: i32) -> (i32, i32, i32) {
    %c0_i32 = arith.constant 0 : i32
    %c0_i32_0 = arith.constant 0 : i32
    %c0_i32_1 = arith.constant 0 : i32
    return %arg0, %c0_i32, %c0_i32_0 : i32, i32, i32
  }
  func.func @transform_2(%arg0: i32) -> (i32, i32, i32) {
    %c0_i32 = arith.constant 0 : i32
    %c0_i32_0 = arith.constant 0 : i32
    %c0_i32_1 = arith.constant 0 : i32
    return %arg0, %c0_i32, %c0_i32_0 : i32, i32, i32
  }
  func.func @transform_3(%arg0: i32) -> (i32, i32, i32) {
    %c0_i32 = arith.constant 0 : i32
    %c0_i32_0 = arith.constant 0 : i32
    %c0_i32_1 = arith.constant 0 : i32
    return %arg0, %c0_i32, %c0_i32_0 : i32, i32, i32
  }
  func.func @transform_4(%arg0: i32) -> (i32, i32, i32) {
    %c0_i32 = arith.constant 0 : i32
    %c0_i32_0 = arith.constant 0 : i32
    %c0_i32_1 = arith.constant 0 : i32
    return %arg0, %c0_i32, %c0_i32_0 : i32, i32, i32
  }
  func.func @transform_5(%arg0: i32) -> (i32, i32, i32) {
    %c0_i32 = arith.constant 0 : i32
    %c0_i32_0 = arith.constant 0 : i32
    %c0_i32_1 = arith.constant 0 : i32
    return %arg0, %c0_i32, %c0_i32_0 : i32, i32, i32
  }
  func.func @transform_6(%arg0: i32) -> (i32, i32, i32) {
    %c0_i32 = arith.constant 0 : i32
    %c0_i32_0 = arith.constant 0 : i32
    %c0_i32_1 = arith.constant 0 : i32
    return %arg0, %c0_i32, %c0_i32_0 : i32, i32, i32
  }
  func.func @transform_7(%arg0: i32) -> (i32, i32, i32) {
    %c0_i32 = arith.constant 0 : i32
    %c0_i32_0 = arith.constant 0 : i32
    %c0_i32_1 = arith.constant 0 : i32
    return %arg0, %c0_i32, %c0_i32_0 : i32, i32, i32
  }
  func.func @transform_8(%arg0: i32) -> (i32, i32, i32) {
    %c0_i32 = arith.constant 0 : i32
    %c0_i32_0 = arith.constant 0 : i32
    %c0_i32_1 = arith.constant 0 : i32
    return %arg0, %c0_i32, %c0_i32_0 : i32, i32, i32
  }
  func.func @transform_9(%arg0: i32) -> (i32, i32, i32) {
    %c0_i32 = arith.constant 0 : i32
    %c0_i32_0 = arith.constant 0 : i32
    %c0_i32_1 = arith.constant 0 : i32
    return %arg0, %c0_i32, %c0_i32_0 : i32, i32, i32
  }
  func.func @transform_10(%arg0: i32) -> (i32, i32, i32) {
    %c0_i32 = arith.constant 0 : i32
    %c0_i32_0 = arith.constant 0 : i32
    %c0_i32_1 = arith.constant 0 : i32
    return %arg0, %c0_i32, %c0_i32_0 : i32, i32, i32
  }
  func.func @transform_11(%arg0: i32) -> (i32, i32, i32) {
    %c0_i32 = arith.constant 0 : i32
    %c0_i32_0 = arith.constant 0 : i32
    %c0_i32_1 = arith.constant 0 : i32
    return %arg0, %c0_i32, %c0_i32_0 : i32, i32, i32
  }
  func.func @transform_12(%arg0: i32) -> (i32, i32, i32) {
    %c0_i32 = arith.constant 0 : i32
    %c0_i32_0 = arith.constant 0 : i32
    %c0_i32_1 = arith.constant 0 : i32
    return %arg0, %c0_i32, %c0_i32_0 : i32, i32, i32
  }
  func.func @transform_13(%arg0: i32) -> (i32, i32, i32) {
    %c0_i32 = arith.constant 0 : i32
    %c0_i32_0 = arith.constant 0 : i32
    %c0_i32_1 = arith.constant 0 : i32
    %c0_i32_2 = arith.constant 0 : i32
    return %c0_i32, %c0_i32_0, %c0_i32_1 : i32, i32, i32
  }
}

</mosaic_0001>

<bundles_post_ra>
// kernel: tpu_custom_call.1
= control target key start
LH: loop header
LB: loop body
LE: loop exit
PB: predicated region body
PF: predicated region fallthrough
CT: control target
= control target key end

     0   :  { %s4711_s0 = inlined_call_operand.hbm [shape: f32[2,8,128], index: 0, kind: input, shape index: {}]   ;;  %s4712_s1 = inlined_call_operand.hbm [shape: f32[4,128,384], index: 1, kind: input, shape index: {}]   ;;  %s4713_s2 = inlined_call_operand.hbm [shape: f32[4,1,384], index: 2, kind: input, shape index: {}]   ;;  %s4714_s3 = inlined_call_operand.hbm [shape: f32[4,128,128], index: 3, kind: input, shape index: {}]   ;;  %s4715_s4 = inlined_call_operand.vmem [shape: f32[4,1,128], index: 4, kind: input, shape index: {}]   ;;  %s4716_s5 = inlined_call_operand.hbm [shape: f32[4,1,128], index: 5, kind: input, shape index: {}]   ;;  %s4717_s6 = inlined_call_operand.hbm [shape: f32[4,1,128], index: 6, kind: input, shape index: {}]   ;;  %s4718_s7 = inlined_call_operand.hbm [shape: f32[4,128,256], index: 7, kind: input, shape index: {}]   ;;  %s4719_s8 = inlined_call_operand.vmem [shape: f32[4,1,256], index: 8, kind: input, shape index: {}]   ;;  %s4720_s9 = inlined_call_operand.hbm [shape: f32[4,256,128], index: 9, kind: input, shape index: {}]   ;;  %s4721_s10 = inlined_call_operand.vmem [shape: f32[4,1,128], index: 10, kind: input, shape index: {}]   ;;  %s4722_s11 = inlined_call_operand.vmem [shape: f32[4,1,128], index: 11, kind: input, shape index: {}]   ;;  %s4723_s12 = inlined_call_operand.hbm [shape: f32[4,1,128], index: 12, kind: input, shape index: {}]   ;;  %s4724_s13 = inlined_call_operand.hbm [shape: f32[2,8,128], index: 13, kind: output, shape index: {}]  }
   0x1   :  { %4738 = sst [smem:[#allocation28_spill]] %s4711_s0 }
   0x2   :  { %4739 = sst [smem:[#allocation29_spill]] %s4712_s1 }
   0x3   :  { %4740 = sst [smem:[#allocation30_spill]] %s4714_s3 }
   0x4   :  { %4741 = sst [smem:[#allocation31_spill]] %s4715_s4 }
   0x5   :  { %4742 = sst [smem:[#allocation32_spill]] %s4717_s6 }
   0x6   :  { %4743 = sst [smem:[#allocation33_spill]] %s4719_s8 }
   0x7   :  { %4744 = sst [smem:[#allocation34_spill]] %s4720_s9 }
   0x8   :  { %4745 = sst [smem:[#allocation35_spill]] %s4721_s10 }
   0x9   :  { %4746 = sst [smem:[#allocation36_spill]] %s4722_s11 }
   0xa   :  { %4747 = sst [smem:[#allocation37_spill]] %s4724_s13 }
   0xb   :  { %18 = vsyncpa [#allocation4], 0 }
   0xc   :  { %19 = vsyncpa [#allocation7], 0 }
   0xd   :  { %21 = vsyncpa [#allocation7 + $0x1], 0 }
   0xe   :  { %22 = vsyncpa [#allocation10], 0 }
   0xf   :  { %24 = vsyncpa [#allocation10 + $0x1], 0 }
  0x10   :  { %25 = vsyncpa [#allocation13], 0 }
  0x11   :  { %27 = vsyncpa [#allocation13 + $0x1], 0 }
  0x12   :  { %28 = vsyncpa [#allocation16], 0 }
  0x13   :  { %30 = vsyncpa [#allocation16 + $0x1], 0 }
  0x14   :  { %31 = vsyncpa [#allocation5], 0  ;;  %s3938_s25 = smov 0   ;;  %s3940_s26 = smov 0  }
  0x15   :  { %s3942_s27 = smov 0   ;;  %s3944_s28 = smov 0  }
  0x16 LB: > { %4748 = sst [smem:[#allocation25_spill]] %s3839_s27  ;;  %s3959_s29 = sadd.s32 1, %s3843_s28   ;;  %s3843_s28 = sphi %s3944_s28, %s4783_s28   ;;  %s3839_s27 = sphi %s3942_s27, %s4785_s27   ;;  %s3835_s26 = sphi %s3940_s26, %s4787_s26   ;;  %s3831_s25 = sphi %s3938_s25, %s4786_s25  }
  0x17   : > { %4749 = sst [smem:[#allocation26_spill]] %s3959_s29  ;;  %s65_s30 = sadd.s32 1, %s3839_s27 }
  0x18   : > { %s62_s14 = ssub.s32 %s3843_s28, %s3959_s29  ;;  %p72_p0 = scmp.ne.s32.totalorder %s3839_s27, %s3835_s26 }
  0x19   : > { %p63_p1 = scmp.eq.s32.totalorder %s62_s14, 0  ;;  %p73_p2 = scmp.eq.s32.totalorder %s3843_s28, 0 }
  0x1a   : > { %p3409_p3 = scmp.lt.s32.totalorder %s3843_s28, 4  ;;  %s3972_s16 = sand.u32 1, %s3843_s28  }
  0x1b   : > { %s3969_s15 = scalar_select %p63_p1, %s3839_s27, %s65_s30  }
  0x1c   : > { %p74_p4 = por %p73_p2, %p72_p0  ;;  %s3975_s17 = sand.u32 1, %s3839_s27  }
  0x1d   : > { %4750 = sst [smem:[#allocation27_spill]] %s3969_s15  ;;  %s3349_s18 = smul.u32 384, %s3975_s17 }
  0x1e   : > { %p3978_p5 = pnand %p3409_p3, %p74_p4  ;;  %s3350_s20 = smul.u32 6144, %s3843_s28 }
  0x1f   : > { %s4752_s1 = sld [smem:[#allocation29_spill]]  ;;  %s426_s24 = scalar_lea.vmem [#allocation6], %s3349_s18 }
  0x20   : > { %s433_s30 = sshll.u32 %s426_s24, 4  ;;  %p3995_p7 = pneg %p3978_p5  ;;  %s3988_s30 = int_to_ptr.vmem [resolvable:$true] %s433_s30 }
  0x25   : > { %s3986_s23 = scalar_lea.hbm %s4752_s1, %s3350_s20  ;;  %s3520_s22 = scalar_lea.hbm %s4752_s1, 24576 }
  0x26   : > { %s3515_s15 = scalar_lea.hbm %s3986_s23, 6144  ;;  %p3521_p10 = scmp.lt.s32.totalorder %s3986_s23, %s4752_s1 }
  0x27   : > { %p3516_p6 = scmp.ne.s32.totalorder %s3986_s23, %s3515_s15  ;;  %p3522_p11 = scmp.lt.s32.totalorder %s3520_s22, %s3515_s15 }
  0x29   : > { %p3518_p8 = pnand %p3995_p7, %p3516_p6  ;;  %p3523_p12 = por %p3522_p11, %p3521_p10 }
  0x2b   : > { %p3519_p9 = pneg %p3518_p8 }
  0x2d   : > { %p3524_p13 = pnand %p3523_p12, %p3519_p9 }
  0x2f   : > { %3527 = shalt.err (!%p3524_p13)
}
  0x30   : > { %s3528_s14 = scalar_lea.vmem %s3988_s30, 6144  ;;  %s3845_s29 = smov [#allocation6]  }
  0x31   : > { %p3529_p0 = scmp.ne.s32.totalorder %s3988_s30, %s3528_s14  ;;  %s3533_s20 = sshll.u32 %s3845_s29, 4  ;;  %s3534_s20 = int_to_ptr.vmem [resolvable:$false] %s3533_s20 }
  0x32   : > { %s3535_s21 = scalar_lea.vmem %s3534_s20, 12288  ;;  %p3536_p3 = scmp.lt.s32.totalorder %s3988_s30, %s3534_s20 }
  0x33   : > { %p3531_p1 = pnand %p3529_p0, %p3995_p7  ;;  %p3537_p4 = scmp.lt.s32.totalorder %s3535_s21, %s3528_s14 }
  0x35   : > { %p3532_p2 = pneg %p3531_p1  ;;  %p3538_p6 = por %p3537_p4, %p3536_p3 }
  0x37   : > { %p3539_p8 = pnand %p3538_p6, %p3532_p2 }
  0x39   : > { %3542 = shalt.err (!%p3539_p8)
}
  0x3a   : > { %s3846_s15 = smov 384   ;;  %s3847_s22 = smov 24  }
  0x3b   : > { %s4754_s29 = scalar_lea.sflag [#allocation7], %s3972_s16  ;;  %s3036_s18 = sshll.u32 %s3975_s17, 7 }
  0x3c   : > { %3386 = dma.hbm_to_vmem [thread:$0]  (!%p3978_p5), %s3986_s23, 6144, %s3988_s30, %s4754_s29, %s3846_s15, %s3846_s15, %s3847_s22  }
  0x3d   : > { %s3090_s24 = sshll.u32 %s3843_s28, 11  ;;  %s4755_s3 = sld [smem:[#allocation30_spill]] }
  0x3e   : > { %s466_s1 = scalar_lea.vmem [#allocation9], %s3036_s18  ;;  %s4029_s11 = sshll.u32 %s3843_s28, 4 }
  0x3f   : > { %s473_s13 = sshll.u32 %s466_s1, 4  ;;  %s4728_s10 = scalar_lea.sflag [#allocation10], %s3972_s16  ;;  %s4026_s13 = int_to_ptr.vmem [resolvable:$true] %s473_s13 }
  0x43   : > { %s4024_s21 = scalar_lea.hbm %s4755_s3, %s3090_s24  ;;  %s3548_s15 = scalar_lea.hbm %s4755_s3, 8192 }
  0x44   : > { %s3543_s8 = scalar_lea.hbm %s4024_s21, 2048  ;;  %p3549_p12 = scmp.lt.s32.totalorder %s4024_s21, %s4755_s3 }
  0x45   : > { %p3544_p9 = scmp.ne.s32.totalorder %s4024_s21, %s3543_s8  ;;  %p3550_p13 = scmp.lt.s32.totalorder %s3548_s15, %s3543_s8 }
  0x47   : > { %p3546_p10 = pnand %p3544_p9, %p3995_p7  ;;  %p3551_p0 = por %p3550_p13, %p3549_p12 }
  0x49   : > { %p3547_p11 = pneg %p3546_p10 }
  0x4b   : > { %p3552_p1 = pnand %p3551_p0, %p3547_p11 }
  0x4d   : > { %3555 = shalt.err (!%p3552_p1)
}
  0x4e   : > { %s3556_s1 = scalar_lea.vmem %s4026_s13, 2048  ;;  %s3848_s18 = smov [#allocation9]  }
  0x4f   : > { %p3557_p2 = scmp.ne.s32.totalorder %s4026_s13, %s3556_s1  ;;  %s3561_s24 = sshll.u32 %s3848_s18, 4  ;;  %s3562_s24 = int_to_ptr.vmem [resolvable:$false] %s3561_s24 }
  0x50   : > { %s3563_s14 = scalar_lea.vmem %s3562_s24, 4096  ;;  %p3564_p6 = scmp.lt.s32.totalorder %s4026_s13, %s3562_s24 }
  0x51   : > { %p3559_p3 = pnand %p3557_p2, %p3995_p7  ;;  %p3565_p8 = scmp.lt.s32.totalorder %s3563_s14, %s3556_s1 }
  0x53   : > { %p3560_p4 = pneg %p3559_p3  ;;  %p3566_p9 = por %p3565_p8, %p3564_p6 }
  0x55   : > { %p3567_p10 = pnand %p3566_p9, %p3560_p4 }
  0x57   : > { %3570 = shalt.err (!%p3567_p10)
}
  0x58   : > { %s4729_s8 = smov 128   ;;  %s4731_s20 = smov 8  }
  0x59   : > { %3392 = dma.hbm_to_vmem [thread:$0]  (!%p3978_p5), %s4024_s21, 2048, %s4026_s13, %s4728_s10, %s4729_s8, %s4729_s8, %s4731_s20  }
  0x5a   : > { %s4756_s6 = sld [smem:[#allocation32_spill]]  ;;  %s509_s22 = scalar_lea.vmem [#allocation12], %s3975_s17 }
  0x5b   : > { %s516_s29 = sshll.u32 %s509_s22, 4  ;;  %s3041_s1 = sshll.u32 %s3975_s17, 8  ;;  %s517_s29 = int_to_ptr.vmem [resolvable:$true] %s516_s29 }
  0x5c   : > { %s4734_s18 = scalar_lea.sflag [#allocation13], %s3972_s16 }
  0x60   : > { %s4061_s15 = scalar_lea.hbm %s4756_s6, %s4029_s11  ;;  %s3576_s21 = scalar_lea.hbm %s4756_s6, 64 }
  0x61   : > { %s3571_s24 = scalar_lea.hbm %s4061_s15, 16  ;;  %p3577_p0 = scmp.lt.s32.totalorder %s4061_s15, %s4756_s6 }
  0x62   : > { %p3572_p11 = scmp.ne.s32.totalorder %s4061_s15, %s3571_s24  ;;  %p3578_p1 = scmp.lt.s32.totalorder %s3576_s21, %s3571_s24 }
  0x64   : > { %p3574_p12 = pnand %p3572_p11, %p3995_p7  ;;  %p3579_p2 = por %p3578_p1, %p3577_p0 }
  0x66   : > { %p3575_p13 = pneg %p3574_p12 }
  0x68   : > { %p3580_p3 = pnand %p3579_p2, %p3575_p13 }
  0x6a   : > { %3583 = shalt.err (!%p3580_p3)
}
  0x6b   : > { %s3584_s22 = scalar_lea.vmem %s517_s29, 16  ;;  %s3851_s10 = smov [#allocation12]  }
  0x6c   : > { %p3585_p4 = scmp.ne.s32.totalorder %s517_s29, %s3584_s22  ;;  %s3589_s8 = sshll.u32 %s3851_s10, 4  ;;  %s3590_s8 = int_to_ptr.vmem [resolvable:$false] %s3589_s8 }
  0x6d   : > { %s3591_s20 = scalar_lea.vmem %s3590_s8, 32  ;;  %p3592_p9 = scmp.lt.s32.totalorder %s517_s29, %s3590_s8 }
  0x6e   : > { %p3587_p6 = pnand %p3585_p4, %p3995_p7  ;;  %p3593_p10 = scmp.lt.s32.totalorder %s3591_s20, %s3584_s22 }
  0x70   : > { %p3588_p8 = pneg %p3587_p6  ;;  %p3594_p11 = por %p3593_p10, %p3592_p9 }
  0x72   : > { %p3595_p12 = pnand %p3594_p11, %p3588_p8 }
  0x74   : > { %3598 = shalt.err (!%p3595_p12)
}
  0x75   : > { %3398 = dma.hbm_to_vmem [thread:$0]  (!%p3978_p5), %s4061_s15, 16, %s517_s29, %s4734_s18  }
  0x76   : > { %s3091_s24 = sshll.u32 %s3843_s28, 12  ;;  %s527_s20 = scalar_lea.vmem [#allocation14], %s3041_s1 }
  0x77   : > { %s4088_s8 = scalar_lea.hbm %s4718_s7, %s3091_s24  ;;  %s534_s13 = sshll.u32 %s527_s20, 4  ;;  %s4092_s13 = int_to_ptr.vmem [resolvable:$true] %s534_s13 }
  0x78   : > { %s4757_s9 = sld [smem:[#allocation34_spill]]  ;;  %s555_s15 = scalar_lea.vmem [#allocation15], %s3041_s1 }
  0x79   : > { %s562_s29 = sshll.u32 %s555_s15, 4  ;;  %s4733_s22 = scalar_lea.sflag [#allocation16], %s3972_s16  ;;  %s4101_s29 = int_to_ptr.vmem [resolvable:$true] %s562_s29 }
  0x7e   : > { %s4097_s30 = scalar_lea.hbm %s4757_s9, %s3091_s24  ;;  %s3604_s21 = scalar_lea.hbm %s4757_s9, 16384 }
  0x7f   : > { %s3599_s10 = scalar_lea.hbm %s4097_s30, 4096  ;;  %p3605_p2 = scmp.lt.s32.totalorder %s4097_s30, %s4757_s9 }
  0x80   : > { %p3600_p13 = scmp.ne.s32.totalorder %s4097_s30, %s3599_s10  ;;  %p3606_p3 = scmp.lt.s32.totalorder %s3604_s21, %s3599_s10 }
  0x82   : > { %p3602_p0 = pnand %p3600_p13, %p3995_p7  ;;  %p3607_p4 = por %p3606_p3, %p3605_p2 }
  0x84   : > { %p3603_p1 = pneg %p3602_p0 }
  0x86   : > { %p3608_p6 = pnand %p3607_p4, %p3603_p1 }
  0x88   : > { %3611 = shalt.err (!%p3608_p6)
}
  0x89   : > { %s3612_s1 = scalar_lea.vmem %s4101_s29, 4096  ;;  %s3852_s15 = smov [#allocation15]  }
  0x8a   : > { %p3613_p8 = scmp.ne.s32.totalorder %s4101_s29, %s3612_s1  ;;  %s3617_s14 = sshll.u32 %s3852_s15, 4  ;;  %s3618_s14 = int_to_ptr.vmem [resolvable:$false] %s3617_s14 }
  0x8b   : > { %s3619_s20 = scalar_lea.vmem %s3618_s14, 8192  ;;  %p3620_p11 = scmp.lt.s32.totalorder %s4101_s29, %s3618_s14 }
  0x8c   : > { %p3615_p9 = pnand %p3613_p8, %p3995_p7  ;;  %p3621_p12 = scmp.lt.s32.totalorder %s3619_s20, %s3612_s1 }
  0x8e   : > { %p3616_p10 = pneg %p3615_p9  ;;  %p3622_p13 = por %p3621_p12, %p3620_p11 }
  0x90   : > { %p3623_p0 = pnand %p3622_p13, %p3616_p10 }
  0x92   : > { %3626 = shalt.err (!%p3623_p0)
}
  0x93   : > { %s4758_s10 = smov 8   ;;  %s4759_s21 = smov 128  }
  0x94   : > { %3404 = dma.hbm_to_vmem [thread:$0]  (!%p3978_p5), %s4097_s30, 4096, %s4101_s29, %s4733_s22, %s4759_s21, %s4759_s21, %s4758_s10  }
  0x95   : > { %s4130_s24 = sadd.s32 4294967295, %s3843_s28   ;;  %p78_p1 = scmp.ne.s32.totalorder %s3835_s26, %s3831_s25 }
  0x96   : > { %p4735_p2 = scmp.eq.s32.totalorder %s4130_s24, 0  ;;  %p3031_p3 = scmp.ge.s32.totalorder %s3843_s28, 1 }
  0x97   : > { %p396_p4 = scmp.lt.s32.totalorder %s3843_s28, 5  ;;  %s3853_s30 = smov [#allocation3]  }
  0x98   : > { %p4140_p8 = por %p4735_p2, %p78_p1  ;;  %s408_s29 = sshll.u32 %s3853_s30, 4  ;;  %s409_s29 = int_to_ptr.vmem [resolvable:$true] %s408_s29 }
  0x99   : > { %p4144_p9 = pnand %p3031_p3, %p396_p4  ;;  %s3351_s15 = smul.u32 3, %s3975_s17 }
  0x9a   : > { %s4760_s23 = scalar_select %p4140_p8, 1, 0 }
  0x9b   : > { %s4761_s1 = scalar_select %p4144_p9, 1, 0 }
  0x9c   : > { %p3379_p10 = pneg %p4144_p9  ;;  %s3352_s25 = smul.u32 48, %s3843_s28 }
  0x9d   : > { %s447_s3 = scalar_lea.vmem [#allocation8], %s3351_s15  ;;  %s4167_s4 = scalar_lea.hbm %s4716_s5, %s4029_s11 }
  0x9e   : > { %p4154_p11 = pnand %p3379_p10, %p4735_p2  ;;  %s4161_s18 = scalar_lea.hbm %s4713_s2, %s3352_s25 }
  0x9f   : > { %s455_s6 = sshll.u32 %s447_s3, 4  ;;  %s3638_s28 = scalar_lea.vmem %s409_s29, 256  ;;  %s4169_s6 = int_to_ptr.vmem [resolvable:$true] %s455_s6 }
  0xa0   : > { %p3629_p12 = pneg %p4154_p11  ;;  %p3639_p13 = scmp.ne.s32.totalorder %s409_s29, %s3638_s28 }
  0xa1   : > { %p3646_p3 = scmp.lt.s32.totalorder %s409_s29, %s409_s29  ;;  %p3647_p4 = scmp.lt.s32.totalorder %s3638_s28, %s3638_s28 }
  0xa2   : > { %p3641_p0 = pnand %p3639_p13, %p3629_p12 }
  0xa3   : > { %p3648_p10 = por %p3647_p4, %p3646_p3 }
  0xa4   : > { %p3642_p1 = pneg %p3641_p0 }
  0xa6   : > { %p3649_p6 = pnand %p3648_p10, %p3642_p1 }
  0xa8   : > { %3652 = shalt.err (!%p3649_p6)
}
  0xa9   : > { %s4763_s0 = sld [smem:[#allocation28_spill]]  ;;  %s3653_s22 = scalar_lea.hbm %s4161_s18, 48 }
  0xaa   : > { %p3654_p12 = scmp.ne.s32.totalorder %s4161_s18, %s3653_s22  ;;  %s3658_s14 = scalar_lea.hbm %s4713_s2, 192 }
  0xab   : > { %p3659_p6 = scmp.lt.s32.totalorder %s4161_s18, %s4713_s2  ;;  %p3660_p1 = scmp.lt.s32.totalorder %s3658_s14, %s3653_s22 }
  0xac   : > { %p3656_p13 = pnand %p3654_p12, %p3995_p7 }
  0xad   : > { %p3661_p3 = por %p3660_p1, %p3659_p6 }
  0xae   : > { %p3657_p0 = pneg %p3656_p13 }
  0xaf   : > { %3382 = dma.hbm_to_vmem [thread:$0]  (!%p4154_p11), %s4763_s0, 256, %s409_s29, [#allocation4], %s4759_s21, %s4759_s21, %s4758_s10  }
  0xb0   : > { %p3662_p4 = pnand %p3661_p3, %p3657_p0 }
  0xb2   : > { %3665 = shalt.err (!%p3662_p4)
}
  0xb3   : > { %s3666_s10 = scalar_lea.vmem %s4169_s6, 48  ;;  %s3854_s21 = smov [#allocation8]  }
  0xb4   : > { %p3667_p11 = scmp.ne.s32.totalorder %s4169_s6, %s3666_s10  ;;  %s3671_s29 = sshll.u32 %s3854_s21, 4  ;;  %s3672_s29 = int_to_ptr.vmem [resolvable:$false] %s3671_s29 }
  0xb5   : > { %s3673_s28 = scalar_lea.vmem %s3672_s29, 96  ;;  %p3674_p13 = scmp.lt.s32.totalorder %s4169_s6, %s3672_s29 }
  0xb6   : > { %p3669_p10 = pnand %p3667_p11, %p3995_p7  ;;  %p3675_p2 = scmp.lt.s32.totalorder %s3673_s28, %s3666_s10 }
  0xb8   : > { %p3670_p12 = pneg %p3669_p10  ;;  %p3676_p8 = por %p3675_p2, %p3674_p13 }
  0xba   : > { %p3677_p9 = pnand %p3676_p8, %p3670_p12 }
  0xbc   : > { %3680 = shalt.err (!%p3677_p9)
}
  0xbd   : > { %s4764_s3 = scalar_lea.sflag [#allocation7], %s3972_s16  ;;  %s492_s9 = scalar_lea.vmem [#allocation11], %s3975_s17 }
  0xbe   : > { %3389 = dma.hbm_to_vmem [thread:$0]  (!%p3978_p5), %s4161_s18, 48, %s4169_s6, %s4764_s3  }
  0xbf   : > { %s499_s22 = sshll.u32 %s492_s9, 4  ;;  %s3681_s15 = scalar_lea.hbm %s4167_s4, 16  ;;  %s500_s22 = int_to_ptr.vmem [resolvable:$true] %s499_s22 }
  0xc0   : > { %p3682_p0 = scmp.ne.s32.totalorder %s4167_s4, %s3681_s15  ;;  %s3686_s20 = scalar_lea.hbm %s4716_s5, 64 }
  0xc1   : > { %p3687_p9 = scmp.lt.s32.totalorder %s4167_s4, %s4716_s5  ;;  %p3688_p6 = scmp.lt.s32.totalorder %s3686_s20, %s3681_s15 }
  0xc2   : > { %p3684_p2 = pnand %p3682_p0, %p3995_p7 }
  0xc3   : > { %p3689_p1 = por %p3688_p6, %p3687_p9 }
  0xc4   : > { %p3685_p8 = pneg %p3684_p2 }
  0xc6   : > { %p3690_p3 = pnand %p3689_p1, %p3685_p8 }
  0xc8   : > { %3693 = shalt.err (!%p3690_p3)
}
  0xc9   : > { %s3694_s6 = scalar_lea.vmem %s500_s22, 16  ;;  %s3855_s18 = smov [#allocation11]  }
  0xca   : > { %p3695_p4 = scmp.ne.s32.totalorder %s500_s22, %s3694_s6  ;;  %s3699_s21 = sshll.u32 %s3855_s18, 4  ;;  %s3700_s21 = int_to_ptr.vmem [resolvable:$false] %s3699_s21 }
  0xcb   : > { %s3701_s29 = scalar_lea.vmem %s3700_s21, 32  ;;  %p3702_p12 = scmp.lt.s32.totalorder %s500_s22, %s3700_s21 }
  0xcc   : > { %p3697_p11 = pnand %p3695_p4, %p3995_p7  ;;  %p3703_p13 = scmp.lt.s32.totalorder %s3701_s29, %s3694_s6 }
  0xce   : > { %p3698_p10 = pneg %p3697_p11  ;;  %p3704_p0 = por %p3703_p13, %p3702_p12 }
  0xd0   : > { %p3705_p2 = pnand %p3704_p0, %p3698_p10 }
  0xd2   : > { %3708 = shalt.err (!%p3705_p2)
}
  0xd3   : > { %s4765_s28 = scalar_lea.sflag [#allocation10], %s3972_s16  ;;  %s3709_s3 = scalar_lea.hbm %s4088_s8, 4096 }
  0xd4   : > { %3395 = dma.hbm_to_vmem [thread:$0]  (!%p3978_p5), %s4167_s4, 16, %s500_s22, %s4765_s28  }
  0xd5   : > { %p3710_p8 = scmp.ne.s32.totalorder %s4088_s8, %s3709_s3  ;;  %s3714_s25 = scalar_lea.hbm %s4718_s7, 16384 }
  0xd6   : > { %p3715_p1 = scmp.lt.s32.totalorder %s4088_s8, %s4718_s7  ;;  %p3716_p3 = scmp.lt.s32.totalorder %s3714_s25, %s3709_s3 }
  0xd7   : > { %p3712_p9 = pnand %p3710_p8, %p3995_p7 }
  0xd8   : > { %p3717_p4 = por %p3716_p3, %p3715_p1 }
  0xd9   : > { %p3713_p6 = pneg %p3712_p9 }
  0xdb   : > { %p3718_p11 = pnand %p3717_p4, %p3713_p6 }
  0xdd   : > { %3721 = shalt.err (!%p3718_p11)
}
  0xde   : > { %s3722_s4 = scalar_lea.vmem %s4092_s13, 4096  ;;  %s3856_s22 = smov [#allocation14]  }
  0xdf   : > { %p3723_p10 = scmp.ne.s32.totalorder %s4092_s13, %s3722_s4  ;;  %s3727_s30 = sshll.u32 %s3856_s22, 4  ;;  %s3728_s30 = int_to_ptr.vmem [resolvable:$false] %s3727_s30 }
  0xe0   : > { %s3729_s10 = scalar_lea.vmem %s3728_s30, 8192  ;;  %p3730_p0 = scmp.lt.s32.totalorder %s4092_s13, %s3728_s30 }
  0xe1   : > { %p3725_p12 = pnand %p3723_p10, %p3995_p7  ;;  %p3731_p2 = scmp.lt.s32.totalorder %s3729_s10, %s3722_s4 }
  0xe3   : > { %p3726_p13 = pneg %p3725_p12  ;;  %p3732_p8 = por %p3731_p2, %p3730_p0 }
  0xe5   : > { %p3733_p9 = pnand %p3732_p8, %p3726_p13 }
  0xe7   : > { %3736 = shalt.err (!%p3733_p9)
}
  0xe8   : > { %s3857_s6 = smov 256   ;;  %s3858_s18 = smov 16  }
  0xe9   : > { %s4766_s21 = scalar_lea.sflag [#allocation13], %s3972_s16  ;;  %s592_s3 = scalar_lea.hbm %s4723_s12, %s4029_s11 }
  0xea   : > { %3401 = dma.hbm_to_vmem [thread:$0]  (!%p3978_p5), %s4088_s8, 4096, %s4092_s13, %s4766_s21, %s3857_s6, %s3857_s6, %s3858_s18  }
  0xeb   : > { %s587_s9 = scalar_lea.vmem [#allocation17], %s3975_s17  ;;  %s3737_s25 = scalar_lea.hbm %s592_s3, 16 }
  0xec   : > { %s594_s15 = sshll.u32 %s587_s9, 4  ;;  %p3738_p6 = scmp.ne.s32.totalorder %s592_s3, %s3737_s25  ;;  %s595_s15 = int_to_ptr.vmem [resolvable:$true] %s594_s15 }
  0xed   : > { %s3742_s4 = scalar_lea.hbm %s4723_s12, 64  ;;  %p3743_p4 = scmp.lt.s32.totalorder %s592_s3, %s4723_s12 }
  0xee   : > { %p3740_p1 = pnand %p3738_p6, %p3995_p7  ;;  %p3744_p11 = scmp.lt.s32.totalorder %s3742_s4, %s3737_s25 }
  0xf0   : > { %p3741_p3 = pneg %p3740_p1  ;;  %p3745_p10 = por %p3744_p11, %p3743_p4 }
  0xf2   : > { %p3746_p12 = pnand %p3745_p10, %p3741_p3 }
  0xf4   : > { %3749 = shalt.err (!%p3746_p12)
}
  0xf5   : > { %s3750_s11 = scalar_lea.vmem %s595_s15, 16  ;;  %s3859_s17 = smov [#allocation17]  }
  0xf6   : > { %p3751_p13 = scmp.ne.s32.totalorder %s595_s15, %s3750_s11  ;;  %s3755_s8 = sshll.u32 %s3859_s17, 4  ;;  %s3756_s8 = int_to_ptr.vmem [resolvable:$false] %s3755_s8 }
  0xf7   : > { %s3757_s13 = scalar_lea.vmem %s3756_s8, 32  ;;  %p3758_p8 = scmp.lt.s32.totalorder %s595_s15, %s3756_s8 }
  0xf8   : > { %p3753_p0 = pnand %p3751_p13, %p3995_p7  ;;  %p3759_p9 = scmp.lt.s32.totalorder %s3757_s13, %s3750_s11 }
  0xfa   : > { %p3754_p2 = pneg %p3753_p0  ;;  %p3760_p6 = por %p3759_p9, %p3758_p8 }
  0xfc   : > { %p3761_p1 = pnand %p3760_p6, %p3754_p2 }
  0xfe   : > { %3764 = shalt.err (!%p3761_p1)
}
  0xff   : > { %s4767_s10 = scalar_lea.sflag [#allocation16], %s3972_s16  ;;  %p4768_p3 = scmp.ne.s32.totalorder %s4761_s1, 0 }
 0x100   : > { %3407 = dma.hbm_to_vmem [thread:$0]  (!%p3978_p5), %s592_s3, 16, %s595_s15, %s4767_s10  }
 0x101   : > { %603 = sbr.rel (%p4768_p3) target bundleno = 4125 (0x101d), region = 72  ;;  %p4769_p7 = scmp.eq.s32.totalorder (!%p4768_p3), %s4130_s24, 0 }
 0x106   : > { %3806 = dma.done.wait (%p4769_p7), [#allocation4], 256   ;;  %p4770_p4 = pmov %p4769_p7 }
 0x107   : > { %s609_s27 = sand.u32 1, %s4130_s24   ;;  %s4271_s6 = sand.u32 1, %s3835_s26  }
 0x108   : > { %3808 = vsyncadd (%p4770_p4), [#allocation4], 4294967040  ;;  %s3353_s19 = smul.u32 384, %s4271_s6  ;;  %s610_s18 = scalar_lea.sflag [#allocation7], %s609_s27 }
 0x109   : > { %p4771_p5 = scmp.ne.s32.totalorder %s4760_s23, 0 }
 0x10a   : > { %s4274_s16 = scalar_lea.vmem [#allocation6], %s3353_s19 }
 0x10b   : > { %3810 = dma.done.wait (%p4771_p5), %s610_s18, 6192  }
 0x10c   : > { %3812 = vsyncadd (%p4771_p5), %s610_s18, 4294961104  ;;  %s3354_s1 = smul.u32 3, %s4271_s6  ;;  %s3050_s21 = sshll.u32 %s4271_s6, 7 }
 0x10d   : > { %s628_s28 = scalar_lea.sflag [#allocation10], %s609_s27  ;;  %s4284_s3 = scalar_lea.vmem [#allocation9], %s3050_s21 }
 0x10e   : > { %s4282_s29 = scalar_lea.vmem [#allocation8], %s3354_s1 }
 0x10f   : > { %3814 = dma.done.wait (%p4771_p5), %s628_s28, 2064  }
 0x110   : > { %3816 = vsyncadd (%p4771_p5), %s628_s28, 4294965232  ;;  %s645_s15 = scalar_lea.sflag [#allocation13], %s609_s27 }
 0x111   : > { %3818 = dma.done.wait (%p4771_p5), %s645_s15, 4112  }
 0x112   : > { %3820 = vsyncadd (%p4771_p5), %s645_s15, 4294963184  ;;  %s3051_s14 = sshll.u32 %s4271_s6, 8  ;;  %s662_s4 = scalar_lea.sflag [#allocation16], %s609_s27 }
 0x113   : > { %s4297_s20 = scalar_lea.vmem [#allocation14], %s3051_s14  ;;  %s4299_s22 = scalar_lea.vmem [#allocation15], %s3051_s14 }
 0x114   : > { %3822 = dma.done.wait (%p4771_p5), %s662_s4, 4112  }
 0x115   : > { %3824 = vsyncadd (%p4771_p5), %s662_s4, 4294963184  ;;  %p756_p11 = scmp.lt.s32.totalorder %s4130_s24, 3  ;;  %s4772_s8 = sld [smem:[#allocation31_spill]] }
 0x116   : > { %s4773_s18 = sld [smem:[#allocation33_spill]]  ;;  %s673_s0 = scalar_lea.vmem [#allocation17], %s4271_s6 }
 0x117   : > { %s4307_s30 = scalar_select %p756_p11, %s4130_s24, 3 }
 0x118   : > { %s4774_s28 = sld [smem:[#allocation35_spill]]  ;;  %p4776_p10 = scmp.ne.s32.totalorder %s4130_s24, 0 }
 0x119   : > { %s3053_s10 = sshll.u32 %s4307_s30, 1  ;;  %s4775_s25 = sld [smem:[#allocation36_spill]] }
 0x11b   : > { %s758_s13 = scalar_lea.vmem %s4772_s8, %s4307_s30  ;;  %772 = sbr.rel (%p4776_p10) target bundleno = 290 (0x122), region = 112 }
 0x11c   : > { %s4317_s23 = scalar_lea.vmem %s4773_s18, %s3053_s10 }
 0x11e   : > { %s765_s15 = scalar_lea.vmem %s4774_s28, %s4307_s30 }
 0x11f   : > { %s768_s9 = scalar_lea.vmem %s4775_s25, %s4307_s30 }
 0x120   : > { %v773_v0 = vld [vmem:[#allocation3] sm:$0xff]  ;;  %v774_v1 = vld [vmem:[#allocation3 + $0x8] sm:$0xff] }
 0x121   : > { %775 = vst [vmem:[#allocation2] sm:$0xff] %v773_v0  ;;  %776 = vst [vmem:[#allocation2 + $0x8] sm:$0xff] %v774_v1 }
 0x122 PF: > { %v825_v2 = vld [vmem:[%s4274_s16 + $0x170] sm:$0xff]  ;;  %v824_v3 = vld [vmem:[%s4274_s16 + $0x168] sm:$0xff]  ;;  %v822_v4 = vld [vmem:[%s4274_s16 + $0x158] sm:$0xff]  ;;  %v3860_v6 = vmov 0.0   ;;  %vm3861_vm0 = vmmov 0   ;;  %v829_v37 = vlaneseq  ;;  %vm996_vm1 = vcmask 261120  }
 0x123   : > { %844 = vmatprep.subr.mxu0 %v825_v2  ;;  %v821_v5 = vld [vmem:[%s4274_s16 + $0x150] sm:$0xff]  ;;  %908 = vmatprep.mubr.f32.mxu0 %v3860_v6  ;;  %v819_v7 = vld [vmem:[%s4274_s16 + $0x140] sm:$0xff]  ;;  %v818_v8 = vld [vmem:[%s4274_s16 + $0x138] sm:$0xff]  ;;  %vm1151_vm2 = vcmask 64512   ;;  %s3864_s25 = smov 32   ;;  %vm2344_vm3 = vcmask 523264  }
 0x124   : > { %845 = vmatpush1.msra.mxu0 %v824_v3  ;;  %v816_v9 = vld [vmem:[%s4274_s16 + $0x128] sm:$0xff]  ;;  %v815_v10 = vld [vmem:[%s4274_s16 + $0x120] sm:$0xff]  ;;  %v813_v11 = vld [vmem:[%s4274_s16 + $0x110] sm:$0xff]  ;;  %v4374_v38 = vshrl.u32 %v829_v37, 7  ;;  %vm2347_vm4 = vcmask 785408   ;;  %s4779_s8 = scalar_lea.vmem [#allocation12], %s4271_s6 }
 0x125   : > { %846 = vmatprep.subr.mxu0 %v822_v4  ;;  %v812_v12 = vld [vmem:[%s4274_s16 + $0x108] sm:$0xff]  ;;  %v810_v13 = vld [vmem:[%s4274_s16 + $0xf8] sm:$0xff]  ;;  %v809_v14 = vld [vmem:[%s4274_s16 + $0xf0] sm:$0xff]  ;;  %p3085_p12 = scmp.ne.s32.totalorder %s4130_s24, 3 }
 0x126   : > { %847 = vmatpush1.msra.mxu0 %v821_v5  ;;  %v807_v15 = vld [vmem:[%s4274_s16 + $0xe0] sm:$0xff]  ;;  %v806_v17 = vld [vmem:[%s4274_s16 + $0xd8] sm:$0xff]  ;;  %v804_v18 = vld [vmem:[%s4274_s16 + $0xc8] sm:$0xff]  ;;  %v831_v39 = vsub.s32 0, %v4374_v38  ;;  %v835_v41 = vsub.s32 1, %v4374_v38 }
 0x127   : > { %848 = vmatprep.subr.mxu0 %v819_v7  ;;  %v803_v19 = vld [vmem:[%s4274_s16 + $0xc0] sm:$0xff]  ;;  %v801_v20 = vld [vmem:[%s4274_s16 + $0xb0] sm:$0xff]  ;;  %v800_v21 = vld [vmem:[%s4274_s16 + $0xa8] sm:$0xff] }
 0x128   : > { %849 = vmatpush1.msra.mxu0 %v818_v8  ;;  %v4344_v16 = vld [vmem:[#allocation2] sm:$0xff]  ;;  %v798_v22 = vld [vmem:[%s4274_s16 + $0x98] sm:$0xff]  ;;  %v797_v23 = vld [vmem:[%s4274_s16 + $0x90] sm:$0xff] }
 0x129   : > { %850 = vmatprep.subr.mxu0 %v816_v9  ;;  %3231 = vmatprep.mubr.f32.mxu1 %v4344_v16  ;;  %v795_v24 = vld [vmem:[%s4274_s16 + $0x80] sm:$0xff]  ;;  %v794_v25 = vld [vmem:[%s4274_s16 + $0x78] sm:$0xff]  ;;  %v792_v26 = vld [vmem:[%s4274_s16 + $0x68] sm:$0xff] }
 0x12a   : > { %851 = vmatpush1.msra.mxu0 %v815_v10  ;;  %v791_v27 = vld [vmem:[%s4274_s16 + $0x60] sm:$0xff]  ;;  %v789_v28 = vld [vmem:[%s4274_s16 + $0x50] sm:$0xff]  ;;  %v788_v29 = vld [vmem:[%s4274_s16 + $0x48] sm:$0xff] }
 0x12b   : > { %852 = vmatprep.subr.mxu0 %v813_v11  ;;  %v786_v30 = vld [vmem:[%s4274_s16 + $0x38] sm:$0xff]  ;;  %v785_v31 = vld [vmem:[%s4274_s16 + $0x30] sm:$0xff]  ;;  %v783_v32 = vld [vmem:[%s4274_s16 + $0x20] sm:$0xff] }
 0x12c   : > { %853 = vmatpush1.msra.mxu0 %v812_v12  ;;  %v782_v33 = vld [vmem:[%s4274_s16 + $0x18] sm:$0xff]  ;;  %v780_v34 = vld [vmem:[%s4274_s16 + $0x8] sm:$0xff]  ;;  %v779_v35 = vld [vmem:[%s4274_s16] sm:$0xff] }
 0x12d   : > { %854 = vmatprep.subr.mxu0 %v810_v13  ;;  %v4369_v36 = vld [vmem:[#allocation2 + $0x8] sm:$0xff]  ;;  %v4378_v40 = vld [vmem:[%s4282_s29] sm:$0x7]  ;;  %s3862_s29 = smov 96   ;;  %v826_v52 = vld [vmem:[%s4274_s16 + $0x178] sm:$0xff] }
 0x12e   : > { %855 = vmatpush1.msra.mxu0 %v809_v14  ;;  %v832_v42 = vrot.slane %v4378_v40, %v831_v39  ;;  %v836_v43 = vrot.slane %v4378_v40, %v835_v41  ;;  %v823_v53 = vld [vmem:[%s4274_s16 + $0x160] sm:$0xff]  ;;  %3199 = vmatprep.subr.mxu1 %v826_v52  ;;  %v820_v54 = vld [vmem:[%s4274_s16 + $0x148] sm:$0xff]  ;;  %v817_v55 = vld [vmem:[%s4274_s16 + $0x130] sm:$0xff] }
 0x12f   : > { %856 = vmatprep.subr.mxu0 %v807_v15  ;;  %3200 = vmatpush3.msra.mxu1 %v826_v52  ;;  %v814_v56 = vld [vmem:[%s4274_s16 + $0x118] sm:$0xff]  ;;  %v811_v57 = vld [vmem:[%s4274_s16 + $0x100] sm:$0xff]  ;;  %v808_v58 = vld [vmem:[%s4274_s16 + $0xe8] sm:$0xff] }
 0x130   : > { %857 = vmatpush1.msra.mxu0 %v806_v17  ;;  %3201 = vmatprep.subr.mxu1 %v823_v53  ;;  %v805_v59 = vld [vmem:[%s4274_s16 + $0xd0] sm:$0xff]  ;;  %v802_v60 = vld [vmem:[%s4274_s16 + $0xb8] sm:$0xff]  ;;  %v799_v61 = vld [vmem:[%s4274_s16 + $0xa0] sm:$0xff] }
 0x131   : > { %858 = vmatprep.subr.mxu0 %v804_v18  ;;  %3202 = vmatpush3.msra.mxu1 %v823_v53  ;;  %v796_v62 = vld [vmem:[%s4274_s16 + $0x88] sm:$0xff]  ;;  %v793_v63 = vld [vmem:[%s4274_s16 + $0x70] sm:$0xff]  ;;  %v790_v0 = vld [vmem:[%s4274_s16 + $0x58] sm:$0xff] }
 0x132   : > { %859 = vmatpush1.msra.mxu0 %v803_v19  ;;  %3203 = vmatprep.subr.mxu1 %v820_v54  ;;  %v787_v1 = vld [vmem:[%s4274_s16 + $0x40] sm:$0xff]  ;;  %v784_v2 = vld [vmem:[%s4274_s16 + $0x28] sm:$0xff]  ;;  %v781_v3 = vld [vmem:[%s4274_s16 + $0x10] sm:$0xff]  ;;  %s3863_s16 = smov 64  }
 0x133   : > { %860 = vmatprep.subr.mxu0 %v801_v20  ;;  %3204 = vmatpush3.msra.mxu1 %v820_v54 }
 0x134   : > { %861 = vmatpush1.msra.mxu0 %v800_v21  ;;  %3205 = vmatprep.subr.mxu1 %v817_v55 }
 0x135   : > { %862 = vmatprep.subr.mxu0 %v798_v22  ;;  %3206 = vmatpush3.msra.mxu1 %v817_v55 }
 0x136   : > { %863 = vmatpush1.msra.mxu0 %v797_v23  ;;  %3207 = vmatprep.subr.mxu1 %v814_v56 }
 0x137   : > { %864 = vmatprep.subr.mxu0 %v795_v24  ;;  %3208 = vmatpush3.msra.mxu1 %v814_v56  ;;  %v839_v24 = vsub.s32 2, %v4374_v38  ;;  %v3082_v38 = vld [vmem:[%s765_s15] ss:$0 sm:$0xff] }
 0x138   : > { %865 = vmatpush1.msra.mxu0 %v794_v25  ;;  %3209 = vmatprep.subr.mxu1 %v811_v57 }
 0x139   : > { %866 = vmatprep.subr.mxu0 %v792_v26  ;;  %3210 = vmatpush3.msra.mxu1 %v811_v57  ;;  %v840_v26 = vrot.slane %v4378_v40, %v839_v24 }
 0x13a   : > { %867 = vmatpush1.msra.mxu0 %v791_v27  ;;  %3211 = vmatprep.subr.mxu1 %v808_v58 }
 0x13b   : > { %868 = vmatprep.subr.mxu0 %v789_v28  ;;  %3212 = vmatpush3.msra.mxu1 %v808_v58 }
 0x13c   : > { %869 = vmatpush1.msra.mxu0 %v788_v29  ;;  %3213 = vmatprep.subr.mxu1 %v805_v59 }
 0x13d   : > { %870 = vmatprep.subr.mxu0 %v786_v30  ;;  %3214 = vmatpush3.msra.mxu1 %v805_v59 }
 0x13e   : > { %871 = vmatpush1.msra.mxu0 %v785_v31  ;;  %3215 = vmatprep.subr.mxu1 %v802_v60 }
 0x13f   : > { %872 = vmatprep.subr.mxu0 %v783_v32  ;;  %3216 = vmatpush3.msra.mxu1 %v802_v60 }
 0x140   : > { %873 = vmatpush1.msra.mxu0 %v782_v33  ;;  %3217 = vmatprep.subr.mxu1 %v799_v61 }
 0x141   : > { %874 = vmatprep.subr.mxu0 %v780_v34  ;;  %3218 = vmatpush3.msra.mxu1 %v799_v61 }
 0x142   : > { %875 = vmatpush1.msra.mxu0 %v779_v35  ;;  %3219 = vmatprep.subr.mxu1 %v796_v62 }
 0x143   : > { %909 = vmatmul.mubr.f32.vlgmr.msra.gmra.mxu0 %v4344_v16  ;;  %3234 = vmatprep.subr.mxu0 %v3860_v6 }
 0x144   : > { %914 = vmatprep.mubr.f32.mxu0 %v3860_v6  ;;  %3220 = vmatpush3.msra.mxu1 %v796_v62 }
 0x145   : > { %3221 = vmatprep.subr.mxu1 %v793_v63 }
 0x146   : > { %3222 = vmatpush3.msra.mxu1 %v793_v63 }
 0x147   : > { %915 = vmatmul.mubr.f32.gmra.mxu0 %v4369_v36  ;;  %3223 = vmatprep.subr.mxu1 %v790_v0 }
 0x148   : > { %3236 = vmatprep.mubr.msk.f32.mxu0 %vm3861_vm0, %v3860_v6  ;;  %3224 = vmatpush3.msra.mxu1 %v790_v0 }
 0x149   : > { %3225 = vmatprep.subr.mxu1 %v787_v1 }
 0x14a   : > { %3226 = vmatpush3.msra.mxu1 %v787_v1 }
 0x14b   : > { %3227 = vmatprep.subr.mxu1 %v784_v2 }
 0x14c   : > { %3228 = vmatpush3.msra.mxu1 %v784_v2 }
 0x14d   : > { %3229 = vmatprep.subr.mxu1 %v781_v3 }
 0x14e   : > { %3230 = vmatpush3.msra.mxu1 %v781_v3 }
 0x14f   : > { %3232 = vmatmul.mubr.f32.vlgmr.msra.gmra.mxu1 %v4369_v36  ;;  %3264 = vmatprep.subr.mxu1 %v3860_v6 }
 0x150   : > { %3266 = vmatprep.mubr.msk.f32.mxu1 %vm3861_vm0, %v3860_v6 }
 0x203   : > { %v910_v44 = vpop.f32.mrf.mxu0 }
 0x204   : > { %v4387_v45 = vadd.f32 %v910_v44, %v832_v42 }
 0x205   : > { %v912_v46 = vpop.f32.mrf.mxu0 }
 0x206   : > { %v4389_v47 = vadd.f32 %v912_v46, %v836_v43  ;;  %1320 = vrot.lane.b32.xlu1 %v4387_v45, %s3862_s29 }
 0x207   : > { %v916_v48 = vpop.f32.mrf.mxu0 }
 0x208   : > { %3235 = vmatpush3.xpose.msk.msra.mxu0 %vm996_vm1, %v4389_v47  ;;  %v4404_v51 = vadd.f32 %v916_v48, %v832_v42 }
 0x209   : > { %v918_v49 = vpop.f32.mrf.mxu0  ;;  %3239 = vmatprep.subr.mxu0 %v3860_v6 }
 0x20a   : > { %v4396_v50 = vadd.f32 %v918_v49, %v836_v43 }
 0x20b   : > { %3237 = vmatmul.mubr.msk.f32.vlgmr.msra.gmra.mxu0 %vm996_vm1, %v4387_v45 }
 0x20c   : > { %3240 = vmatpush3.xpose.msk.msra.mxu0 %vm996_vm1, %v4396_v50  ;;  %1400 = vrot.lane.b32.xlu1 %v4396_v50, %s3862_s29 }
 0x20d   : > { %3241 = vmatprep.mubr.msk.f32.mxu0 %vm3861_vm0, %v3860_v6  ;;  %3244 = vmatprep.subr.mxu0 %v3860_v6 }
 0x20f   : > { %3242 = vmatmul.mubr.msk.f32.vlgmr.msra.gmra.mxu0 %vm996_vm1, %v4404_v51  ;;  %v3233_v25 = vpop.f32.mrf.mxu1 }
 0x210   : > { %3246 = vmatprep.mubr.msk.f32.mxu0 %vm3861_vm0, %v3860_v6  ;;  %v4443_v28 = vadd.f32 %v3233_v25, %v840_v26 }
 0x211   : > { %v987_v27 = vpop.f32.mrf.mxu1 }
 0x212   : > { %v4445_v29 = vadd.f32 %v987_v27, %v840_v26 }
 0x214   : > { %3245 = vmatpush3.msra.mxu0 %v4445_v29 }
 0x215   : > { %3249 = vmatprep.subr.mxu0 %v3860_v6 }
 0x278   : > { %v1321_v30 = vpop.permute.xlu1 %1320 }
 0x27e   : > { %v1401_v31 = vpop.permute.xlu1 %1400 }
 0x2cb   : > { %v1069_v4 = vpop.f32.mrf.mxu0 }
 0x2cc   : > { %v1149_v5 = vmul.f32 0.17677669, %v1069_v4 }
 0x2cd   : > { %v3238_v7 = vpop.f32.mrf.mxu0 }
 0x2ce   : > { %v1152_v8 = vsel %vm1151_vm2, %v1149_v5, -inf }
 0x2cf   : > { %1153 = vmax.xlane.f32.xlu0 %v1152_v8  ;;  %v1145_v9 = vpop.f32.mrf.mxu0 }
 0x2d0   : > { %v1150_v10 = vmul.f32 0.17677669, %v1145_v9 }
 0x2d1   : > { %v3243_v11 = vpop.f32.mrf.mxu0 }
 0x2d2   : > { %v1155_v12 = vsel %vm1151_vm2, %v1150_v10, -inf }
 0x2d3   : > { %1156 = vmax.xlane.f32.xlu0 %v1155_v12 }
 0x2e9   : > { %1322 = vrot.lane.b32.xlu0 %v4389_v47, %s3862_s29 }
 0x358   : > { %v1154_v13 = vpop.xlane.xlu0 %1153 }
 0x359   : > { %v1158_v14 = vsub.f32 %v1149_v5, %v1154_v13 }
 0x35b   : > { %v1160_v15 = vmul.f32 1.442695, %v1158_v14 }
 0x35c   : > { %v1157_v17 = vpop.xlane.xlu0 %1156 }
 0x35d   : > { %3475 = vpow2.f32 %v1160_v15  ;;  %v1159_v18 = vsub.f32 %v1150_v10, %v1157_v17 }
 0x35f   : > { %v1162_v19 = vmul.f32 1.442695, %v1159_v18 }
 0x360   : > { %v1323_v42 = vpop.permute.xlu0 %1322 }
 0x361   : > { %3477 = vpow2.f32 %v1162_v19 }
 0x36a   : > { %v3476_v20 = vpop.eup %3475 }
 0x36b   : > { %v1164_v21 = vsel %vm1151_vm2, %v3476_v20, 0.0 }
 0x36c   : > { %1165 = vadd.xlane.f32.xlu1 %v1164_v21 }
 0x36e   : > { %v3478_v22 = vpop.eup %3477 }
 0x36f   : > { %v1167_v23 = vsel %vm1151_vm2, %v3478_v22, 0.0 }
 0x370   : > { %1168 = vadd.xlane.f32.xlu1 %v1167_v23 }
 0x381   : > { %1398 = vrot.lane.b32.xlu1 %v4404_v51, %s3862_s29 }
 0x3f5   : > { %v1166_v32 = vpop.xlane.xlu1 %1165 }
 0x3f6   : > { %3479 = vrcp.f32 %v1166_v32 }
 0x3f9   : > { %v1169_v33 = vpop.xlane.xlu1 %1168 }
 0x3fa   : > { %3481 = vrcp.f32 %v1169_v33 }
 0x3fd   : > { %v1399_v43 = vpop.permute.xlu1 %1398 }
 0x403   : > { %v3480_v34 = vpop.eup %3479 }
 0x404   : > { %v1171_v35 = vmul.f32 %v3480_v34, %v3476_v20 }
 0x406   : > { %3247 = vmatmul.mubr.msk.f32.vlgmr.msra.gmra.mxu0 %vm1151_vm2, %v1171_v35 }
 0x407   : > { %v3482_v37 = vpop.eup %3481  ;;  %3250 = vmatpush3.msra.mxu0 %v4443_v28  ;;  %3251 = vmatprep.mubr.msk.f32.mxu0 %vm3861_vm0, %v3860_v6 }
 0x408   : > { %3254 = vmatprep.subr.mxu0 %v3860_v6  ;;  %v1173_v40 = vmul.f32 %v3482_v37, %v3478_v22 }
 0x40a   : > { %3252 = vmatmul.mubr.msk.f32.vlgmr.msra.gmra.mxu0 %vm1151_vm2, %v1173_v40 }
 0x40b   : > { %3255 = vmatpush3.xpose.msk.msra.mxu0 %vm996_vm1, %v1323_v42  ;;  %3256 = vmatprep.mubr.msk.f32.mxu0 %vm3861_vm0, %v3860_v6 }
 0x40c   : > { %3259 = vmatprep.subr.mxu0 %v3860_v6 }
 0x40e   : > { %3257 = vmatmul.mubr.msk.f32.vlgmr.msra.gmra.mxu0 %vm996_vm1, %v1321_v30 }
 0x40f   : > { %3260 = vmatpush3.xpose.msk.msra.mxu0 %vm996_vm1, %v1401_v31  ;;  %3261 = vmatprep.mubr.msk.f32.mxu0 %vm3861_vm0, %v3860_v6 }
 0x410   : > { %3269 = vmatprep.subr.mxu0 %v3860_v6 }
 0x412   : > { %3262 = vmatmul.mubr.msk.f32.vlgmr.msra.gmra.mxu0 %vm996_vm1, %v1399_v43 }
 0x413   : > { %3271 = vmatprep.mubr.msk.f32.mxu0 %vm3861_vm0, %v3860_v6 }
 0x4c6   : > { %v4467_v44 = vpop.f32.mrf.mxu0 }
 0x4c8   : > { %v3248_v46 = vpop.f32.mrf.mxu0 }
 0x4ca   : > { %v4469_v48 = vpop.f32.mrf.mxu0 }
 0x4cc   : > { %v3253_v49 = vpop.f32.mrf.mxu0 }
 0x4ce   : > { %v1394_v52 = vpop.f32.mrf.mxu0 }
 0x4cf   : > { %v1476_v53 = vmul.f32 0.17677669, %v1394_v52 }
 0x4d0   : > { %v3258_v54 = vpop.f32.mrf.mxu0 }
 0x4d1   : > { %v1478_v55 = vsel %vm1151_vm2, %v1476_v53, -inf }
 0x4d2   : > { %1479 = vmax.xlane.f32.xlu0 %v1478_v55  ;;  %v1472_v56 = vpop.f32.mrf.mxu0 }
 0x4d3   : > { %v1477_v57 = vmul.f32 0.17677669, %v1472_v56 }
 0x4d4   : > { %v3263_v58 = vpop.f32.mrf.mxu0 }
 0x4d5   : > { %v1481_v59 = vsel %vm1151_vm2, %v1477_v57, -inf }
 0x4d6   : > { %1482 = vmax.xlane.f32.xlu1 %v1481_v59 }
 0x4e7   : > { %1578 = vrot.lane.b32.xlu1 %v4443_v28, %s3862_s29 }
 0x4e8   : > { %1501 = vrot.lane.b32.xlu0 %v4445_v29, %s3862_s29 }
 0x4eb   : > { %1656 = vrot.lane.b32.xlu1 %v4389_v47, %s3863_s16 }
 0x4ef   : > { %1734 = vrot.lane.b32.xlu1 %v4396_v50, %s3863_s16 }
 0x4f3   : > { %1732 = vrot.lane.b32.xlu1 %v4404_v51, %s3863_s16 }
 0x55b   : > { %v1480_v60 = vpop.xlane.xlu0 %1479 }
 0x55c   : > { %v1484_v61 = vsub.f32 %v1476_v53, %v1480_v60 }
 0x55e   : > { %v1486_v62 = vmul.f32 1.442695, %v1484_v61 }
 0x55f   : > { %v1502_v63 = vpop.permute.xlu0 %1501  ;;  %v1483_v0 = vpop.xlane.xlu1 %1482 }
 0x560   : > { %3483 = vpow2.f32 %v1486_v62  ;;  %v1485_v1 = vsub.f32 %v1477_v57, %v1483_v0  ;;  %3265 = vmatpush3.msra.mxu1 %v1502_v63 }
 0x561   : > { %3274 = vmatprep.subr.mxu1 %v3860_v6 }
 0x562   : > { %v1488_v2 = vmul.f32 1.442695, %v1485_v1 }
 0x563   : > { %v1579_v3 = vpop.permute.xlu1 %1578 }
 0x564   : > { %3485 = vpow2.f32 %v1488_v2  ;;  %3270 = vmatpush3.msra.mxu0 %v1579_v3 }
 0x565   : > { %3279 = vmatprep.subr.mxu0 %v3860_v6 }
 0x567   : > { %v1657_v11 = vpop.permute.xlu1 %1656 }
 0x56b   : > { %v1735_v15 = vpop.permute.xlu1 %1734 }
 0x56d   : > { %v3484_v4 = vpop.eup %3483 }
 0x56e   : > { %v1490_v5 = vsel %vm1151_vm2, %v3484_v4, 0.0 }
 0x56f   : > { %1491 = vadd.xlane.f32.xlu0 %v1490_v5  ;;  %v1733_v19 = vpop.permute.xlu1 %1732 }
 0x571   : > { %v3486_v7 = vpop.eup %3485 }
 0x572   : > { %v1493_v8 = vsel %vm1151_vm2, %v3486_v7, 0.0 }
 0x573   : > { %1494 = vadd.xlane.f32.xlu0 %v1493_v8 }
 0x589   : > { %1654 = vrot.lane.b32.xlu0 %v4387_v45, %s3863_s16 }
 0x5f8   : > { %v1492_v9 = vpop.xlane.xlu0 %1491 }
 0x5f9   : > { %3487 = vrcp.f32 %v1492_v9 }
 0x5fc   : > { %v1495_v10 = vpop.xlane.xlu0 %1494 }
 0x5fd   : > { %3489 = vrcp.f32 %v1495_v10 }
 0x600   : > { %v1655_v18 = vpop.permute.xlu0 %1654 }
 0x606   : > { %v3488_v12 = vpop.eup %3487 }
 0x607   : > { %v1497_v13 = vmul.f32 %v3488_v12, %v3484_v4 }
 0x609   : > { %3267 = vmatmul.mubr.msk.f32.vlgmr.msra.gmra.mxu1 %vm1151_vm2, %v1497_v13 }
 0x60a   : > { %v3490_v14 = vpop.eup %3489  ;;  %3275 = vmatpush3.xpose.msk.msra.mxu1 %vm996_vm1, %v1657_v11  ;;  %3276 = vmatprep.mubr.msk.f32.mxu1 %vm3861_vm0, %v3860_v6 }
 0x60b   : > { %v1499_v17 = vmul.f32 %v3490_v14, %v3486_v7  ;;  %3284 = vmatprep.subr.mxu1 %v3860_v6 }
 0x60d   : > { %3272 = vmatmul.mubr.msk.f32.vlgmr.msra.gmra.mxu0 %vm1151_vm2, %v1499_v17  ;;  %3277 = vmatmul.mubr.msk.f32.vlgmr.msra.gmra.mxu1 %vm996_vm1, %v1655_v18 }
 0x60e   : > { %3280 = vmatpush3.xpose.msk.msra.mxu0 %vm996_vm1, %v1735_v15  ;;  %3281 = vmatprep.mubr.msk.f32.mxu0 %vm3861_vm0, %v3860_v6 }
 0x60f   : > { %3289 = vmatprep.subr.mxu0 %v3860_v6  ;;  %3286 = vmatprep.mubr.msk.f32.mxu1 %vm3861_vm0, %v3860_v6 }
 0x611   : > { %3282 = vmatmul.mubr.msk.f32.vlgmr.msra.gmra.mxu0 %vm996_vm1, %v1733_v19 }
 0x612   : > { %3291 = vmatprep.mubr.msk.f32.mxu0 %vm3861_vm0, %v3860_v6 }
 0x6c9   : > { %v4505_v20 = vpop.f32.mrf.mxu1 }
 0x6cb   : > { %v3268_v21 = vpop.f32.mrf.mxu1 }
 0x6cd   : > { %v4507_v22 = vpop.f32.mrf.mxu0  ;;  %v1728_v23 = vpop.f32.mrf.mxu1 }
 0x6ce   : > { %v3460_v24 = vpack.i.bf16 %v4507_v22, %v4505_v20  ;;  %v1810_v25 = vmul.f32 0.17677669, %v1728_v23 }
 0x6cf   : > { %v3273_v26 = vpop.f32.mrf.mxu0  ;;  %v3278_v27 = vpop.f32.mrf.mxu1 }
 0x6d0   : > { %v1812_v30 = vsel %vm1151_vm2, %v1810_v25, -inf }
 0x6d1   : > { %1813 = vmax.xlane.f32.xlu0 %v1812_v30  ;;  %v1806_v31 = vpop.f32.mrf.mxu0 }
 0x6d2   : > { %v1811_v32 = vmul.f32 0.17677669, %v1806_v31 }
 0x6d3   : > { %v3283_v33 = vpop.f32.mrf.mxu0 }
 0x6d4   : > { %v1815_v34 = vsel %vm1151_vm2, %v1811_v32, -inf  ;;  %v2364_v33 = vld [vmem:[%s4284_s3 + $0x70] sm:$0xff] }
 0x6d5   : > { %1816 = vmax.xlane.f32.xlu1 %v1815_v34  ;;  %v2363_v34 = vld [vmem:[%s4284_s3 + $0x68] sm:$0xff] }
 0x6e6   : > { %1910 = vrot.lane.b32.xlu1 %v4443_v28, %s3863_s16 }
 0x6e7   : > { %1834 = vrot.lane.b32.xlu0 %v4445_v29, %s3863_s16 }
 0x6ea   : > { %1988 = vrot.lane.b32.xlu1 %v4389_v47, %s3864_s25 }
 0x6ee   : > { %2066 = vrot.lane.b32.xlu1 %v4396_v50, %s3864_s25 }
 0x6f2   : > { %2064 = vrot.lane.b32.xlu1 %v4404_v51, %s3864_s25 }
 0x75a   : > { %v1814_v35 = vpop.xlane.xlu0 %1813 }
 0x75b   : > { %v1818_v37 = vsub.f32 %v1810_v25, %v1814_v35  ;;  %v2362_v35 = vld [vmem:[%s4284_s3 + $0x60] sm:$0xff] }
 0x75d   : > { %v1820_v40 = vmul.f32 1.442695, %v1818_v37  ;;  %v2361_v37 = vld [vmem:[%s4284_s3 + $0x58] sm:$0xff] }
 0x75e   : > { %v1835_v42 = vpop.permute.xlu0 %1834  ;;  %v1817_v43 = vpop.xlane.xlu1 %1816 }
 0x75f   : > { %3491 = vpow2.f32 %v1820_v40  ;;  %v1819_v46 = vsub.f32 %v1811_v32, %v1817_v43  ;;  %3285 = vmatpush3.msra.mxu1 %v1835_v42  ;;  %v2360_v40 = vld [vmem:[%s4284_s3 + $0x50] sm:$0xff]  ;;  %v2359_v42 = vld [vmem:[%s4284_s3 + $0x48] sm:$0xff]  ;;  %v2358_v43 = vld [vmem:[%s4284_s3 + $0x40] sm:$0xff] }
 0x760   : > { %3294 = vmatprep.subr.mxu1 %v3860_v6 }
 0x761   : > { %v1822_v49 = vmul.f32 1.442695, %v1819_v46  ;;  %v2357_v46 = vld [vmem:[%s4284_s3 + $0x38] sm:$0xff] }
 0x762   : > { %v1911_v52 = vpop.permute.xlu1 %1910 }
 0x763   : > { %3493 = vpow2.f32 %v1822_v49  ;;  %3290 = vmatpush3.msra.mxu0 %v1911_v52  ;;  %v2356_v49 = vld [vmem:[%s4284_s3 + $0x30] sm:$0xff]  ;;  %v2355_v52 = vld [vmem:[%s4284_s3 + $0x28] sm:$0xff] }
 0x764   : > { %3299 = vmatprep.subr.mxu0 %v3860_v6 }
 0x766   : > { %v1989_v56 = vpop.permute.xlu1 %1988 }
 0x76a   : > { %v2067_v60 = vpop.permute.xlu1 %2066 }
 0x76c   : > { %v3492_v47 = vpop.eup %3491 }
 0x76d   : > { %v1824_v50 = vsel %vm1151_vm2, %v3492_v47, 0.0 }
 0x76e   : > { %1825 = vadd.xlane.f32.xlu0 %v1824_v50  ;;  %v2065_v62 = vpop.permute.xlu1 %2064  ;;  %v2353_v50 = vld [vmem:[%s4284_s3 + $0x18] sm:$0xff] }
 0x770   : > { %v3494_v51 = vpop.eup %3493 }
 0x771   : > { %v1827_v53 = vsel %vm1151_vm2, %v3494_v51, 0.0 }
 0x772   : > { %1828 = vadd.xlane.f32.xlu0 %v1827_v53  ;;  %v2351_v53 = vld [vmem:[%s4284_s3 + $0x8] sm:$0xff] }
 0x788   : > { %1986 = vrot.lane.b32.xlu0 %v4387_v45, %s3864_s25 }
 0x7f7   : > { %v1826_v54 = vpop.xlane.xlu0 %1825 }
 0x7f8   : > { %3495 = vrcp.f32 %v1826_v54  ;;  %v2350_v54 = vld [vmem:[%s4284_s3] sm:$0xff] }
 0x7fb   : > { %v1829_v55 = vpop.xlane.xlu0 %1828 }
 0x7fc   : > { %3497 = vrcp.f32 %v1829_v55 }
 0x7ff   : > { %v1987_v45 = vpop.permute.xlu0 %1986 }
 0x805   : > { %v3496_v57 = vpop.eup %3495 }
 0x806   : > { %v1831_v58 = vmul.f32 %v3496_v57, %v3492_v47  ;;  %v2354_v47 = vld [vmem:[%s4284_s3 + $0x20] sm:$0xff] }
 0x808   : > { %3287 = vmatmul.mubr.msk.f32.vlgmr.msra.gmra.mxu1 %vm1151_vm2, %v1831_v58 }
 0x809   : > { %v3498_v59 = vpop.eup %3497  ;;  %3295 = vmatpush3.xpose.msk.msra.mxu1 %vm996_vm1, %v1989_v56  ;;  %3296 = vmatprep.mubr.msk.f32.mxu1 %vm3861_vm0, %v3860_v6 }
 0x80a   : > { %v1833_v61 = vmul.f32 %v3498_v59, %v3494_v51  ;;  %3304 = vmatprep.subr.mxu1 %v3860_v6  ;;  %v2352_v51 = vld [vmem:[%s4284_s3 + $0x10] sm:$0xff] }
 0x80c   : > { %3292 = vmatmul.mubr.msk.f32.vlgmr.msra.gmra.mxu0 %vm1151_vm2, %v1833_v61  ;;  %3297 = vmatmul.mubr.msk.f32.vlgmr.msra.gmra.mxu1 %vm996_vm1, %v1987_v45 }
 0x80d   : > { %3300 = vmatpush3.xpose.msk.msra.mxu0 %vm996_vm1, %v2067_v60  ;;  %3301 = vmatprep.mubr.msk.f32.mxu0 %vm3861_vm0, %v3860_v6 }
 0x80e   : > { %3309 = vmatprep.subr.mxu0 %v3860_v6  ;;  %3306 = vmatprep.mubr.msk.f32.mxu1 %vm3861_vm0, %v3860_v6 }
 0x810   : > { %3302 = vmatmul.mubr.msk.f32.vlgmr.msra.gmra.mxu0 %vm996_vm1, %v2065_v62 }
 0x811   : > { %3311 = vmatprep.mubr.msk.f32.mxu0 %vm3861_vm0, %v3860_v6 }
 0x8c8   : > { %v1906_v63 = vpop.f32.mrf.mxu1 }
 0x8ca   : > { %v3288_v0 = vpop.f32.mrf.mxu1 }
 0x8cc   : > { %v1982_v1 = vpop.f32.mrf.mxu0  ;;  %v2060_v2 = vpop.f32.mrf.mxu1 }
 0x8cd   : > { %v2142_v3 = vmul.f32 0.17677669, %v2060_v2  ;;  %v3465_v12 = vpack.i.bf16 %v1982_v1, %v1906_v63 }
 0x8ce   : > { %v3293_v4 = vpop.f32.mrf.mxu0  ;;  %v3298_v5 = vpop.f32.mrf.mxu1 }
 0x8cf   : > { %v2144_v7 = vsel %vm1151_vm2, %v2142_v3, -inf }
 0x8d0   : > { %2145 = vmax.xlane.f32.xlu0 %v2144_v7  ;;  %v2138_v8 = vpop.f32.mrf.mxu0 }
 0x8d1   : > { %v2143_v9 = vmul.f32 0.17677669, %v2138_v8 }
 0x8d2   : > { %v3303_v10 = vpop.f32.mrf.mxu0 }
 0x8d3   : > { %v2147_v11 = vsel %vm1151_vm2, %v2143_v9, -inf }
 0x8d4   : > { %2148 = vmax.xlane.f32.xlu1 %v2147_v11 }
 0x8e5   : > { %2242 = vrot.lane.b32.xlu1 %v4443_v28, %s3864_s25 }
 0x8e9   : > { %3461 = vrot.lane.b32.xlu1 %v3460_v24, %s3864_s25 }
 0x8ed   : > { %3466 = vrot.lane.b32.xlu1 %v3465_v12, %s3863_s16 }
 0x959   : > { %v2146_v13 = vpop.xlane.xlu0 %2145 }
 0x95a   : > { %v2150_v14 = vsub.f32 %v2142_v3, %v2146_v13 }
 0x95c   : > { %v2152_v15 = vmul.f32 1.442695, %v2150_v14 }
 0x95d   : > { %v2149_v17 = vpop.xlane.xlu1 %2148 }
 0x95e   : > { %3499 = vpow2.f32 %v2152_v15  ;;  %v2151_v18 = vsub.f32 %v2143_v9, %v2149_v17  ;;  %v2522_v17 = vld [vmem:[%s4297_s20 + $0xf8] sm:$0xff] }
 0x960   : > { %v2154_v19 = vmul.f32 1.442695, %v2151_v18  ;;  %v2521_v18 = vld [vmem:[%s4297_s20 + $0xf0] sm:$0xff] }
 0x961   : > { %v2243_v21 = vpop.permute.xlu1 %2242 }
 0x962   : > { %3501 = vpow2.f32 %v2154_v19  ;;  %3310 = vmatpush3.msra.mxu0 %v2243_v21  ;;  %v2520_v19 = vld [vmem:[%s4297_s20 + $0xe8] sm:$0xff]  ;;  %v2519_v21 = vld [vmem:[%s4297_s20 + $0xe0] sm:$0xff] }
 0x963   : > { %2535 = vmatprep.subr.mxu0 %v2522_v17  ;;  %v2637_v17 = vld [vmem:[%s4299_s22 + $0xa8] sm:$0xff] }
 0x965   : > { %v3462_v60 = vpop.permute.xlu1 %3461 }
 0x966   : > { %v3464_v45 = vunpack.i.h.bf16 %v3462_v60  ;;  %v3463_v62 = vunpack.i.l.bf16 %v3462_v60  ;;  %v2492_v60 = vld [vmem:[%s4297_s20 + $0x8] sm:$0xff] }
 0x968   : > { %v2343_v2 = vsel %vm996_vm1, %v4469_v48, %v3464_v45  ;;  %v2342_v5 = vsel %vm996_vm1, %v4467_v44, %v3463_v62  ;;  %v3079_v48 = vld [vmem:[%s758_s13] ss:$0 sm:$0xff]  ;;  %v2647_v45 = vld [vmem:[%s4299_s22 + $0xf8] sm:$0xff] }
 0x969   : > { %v3467_v61 = vpop.permute.xlu1 %3466  ;;  %v2631_v62 = vld [vmem:[%s4299_s22 + $0x78] sm:$0xff] }
 0x96a   : > { %v3469_v63 = vunpack.i.h.bf16 %v3467_v61  ;;  %v3468_v0 = vunpack.i.l.bf16 %v3467_v61  ;;  %v2491_v61 = vld [vmem:[%s4297_s20] sm:$0xff] }
 0x96b   : > { %v3500_v23 = vpop.eup %3499 }
 0x96c   : > { %v2156_v28 = vsel %vm1151_vm2, %v3500_v23, 0.0  ;;  %v2345_v7 = vsel %vm2344_vm3, %v2342_v5, %v3468_v0  ;;  %v2346_v8 = vsel %vm2344_vm3, %v2343_v2, %v3469_v63  ;;  %v2646_v63 = vld [vmem:[%s4299_s22 + $0xf0] sm:$0xff]  ;;  %v2629_v2 = vld [vmem:[%s4299_s22 + $0x68] sm:$0xff]  ;;  %v2643_v5 = vld [vmem:[%s4299_s22 + $0xd8] sm:$0xff] }
 0x96d   : > { %2157 = vadd.xlane.f32.xlu0 %v2156_v28  ;;  %v2517_v28 = vld [vmem:[%s4297_s20 + $0xd0] sm:$0xff] }
 0x96e   : > { %v2630_v0 = vld [vmem:[%s4299_s22 + $0x70] sm:$0xff] }
 0x96f   : > { %v3502_v25 = vpop.eup %3501 }
 0x970   : > { %v2159_v20 = vsel %vm1151_vm2, %v3502_v25, 0.0 }
 0x971   : > { %2160 = vadd.xlane.f32.xlu0 %v2159_v20  ;;  %v2515_v20 = vld [vmem:[%s4297_s20 + $0xc0] sm:$0xff] }
 0x987   : > { %2166 = vrot.lane.b32.xlu0 %v4445_v29, %s3864_s25  ;;  %v2365_v29 = vld [vmem:[%s4284_s3 + $0x78] sm:$0xff] }
 0x9f6   : > { %v2158_v22 = vpop.xlane.xlu0 %2157 }
 0x9f7   : > { %3503 = vrcp.f32 %v2158_v22 }
 0x9fa   : > { %v2161_v24 = vpop.xlane.xlu0 %2160 }
 0x9fb   : > { %3505 = vrcp.f32 %v2161_v24 }
 0x9fe   : > { %v2167_v26 = vpop.permute.xlu0 %2166 }
 0x9ff   : > { %3305 = vmatpush3.msra.mxu1 %v2167_v26 }
 0xa00   : > { %3314 = vmatprep.subr.mxu1 %v2365_v29 }
 0xa04   : > { %v3504_v27 = vpop.eup %3503 }
 0xa05   : > { %v2163_v30 = vmul.f32 %v3504_v27, %v3500_v23  ;;  %v2518_v23 = vld [vmem:[%s4297_s20 + $0xd8] sm:$0xff] }
 0xa07   : > { %3307 = vmatmul.mubr.msk.f32.vlgmr.msra.gmra.mxu1 %vm1151_vm2, %v2163_v30 }
 0xa08   : > { %v3506_v31 = vpop.eup %3505  ;;  %3315 = vmatpush3.msra.mxu1 %v2365_v29  ;;  %v2513_v29 = vld [vmem:[%s4297_s20 + $0xb0] sm:$0xff] }
 0xa09   : > { %v2165_v32 = vmul.f32 %v3506_v31, %v3502_v25  ;;  %3316 = vmatprep.subr.mxu1 %v2364_v33  ;;  %v2516_v25 = vld [vmem:[%s4297_s20 + $0xc8] sm:$0xff] }
 0xa0a   : > { %3317 = vmatpush3.msra.mxu1 %v2364_v33  ;;  %v2512_v33 = vld [vmem:[%s4297_s20 + $0xa8] sm:$0xff] }
 0xa0b   : > { %3312 = vmatmul.mubr.msk.f32.vlgmr.msra.gmra.mxu0 %vm1151_vm2, %v2165_v32  ;;  %3318 = vmatprep.subr.mxu1 %v2363_v34  ;;  %v2514_v32 = vld [vmem:[%s4297_s20 + $0xb8] sm:$0xff] }
 0xa0c   : > { %2599 = vmatprep.mubr.f32.mxu0 %v3860_v6  ;;  %3319 = vmatpush3.msra.mxu1 %v2363_v34  ;;  %v2511_v34 = vld [vmem:[%s4297_s20 + $0xa0] sm:$0xff] }
 0xa0d   : > { %3320 = vmatprep.subr.mxu1 %v2362_v35  ;;  %2536 = vmatpush1.msra.mxu0 %v2521_v18  ;;  %v2621_v18 = vld [vmem:[%s4299_s22 + $0x28] sm:$0xff] }
 0xa0e   : > { %3321 = vmatpush3.msra.mxu1 %v2362_v35  ;;  %2537 = vmatprep.subr.mxu0 %v2520_v19  ;;  %v2510_v35 = vld [vmem:[%s4297_s20 + $0x98] sm:$0xff]  ;;  %v2636_v19 = vld [vmem:[%s4299_s22 + $0xa0] sm:$0xff] }
 0xa0f   : > { %3322 = vmatprep.subr.mxu1 %v2361_v37  ;;  %2538 = vmatpush1.msra.mxu0 %v2519_v21  ;;  %v2620_v21 = vld [vmem:[%s4299_s22 + $0x20] sm:$0xff] }
 0xa10   : > { %3323 = vmatpush3.msra.mxu1 %v2361_v37  ;;  %2539 = vmatprep.subr.mxu0 %v2518_v23  ;;  %v2509_v37 = vld [vmem:[%s4297_s20 + $0x90] sm:$0xff] }
 0xa11   : > { %3324 = vmatprep.subr.mxu1 %v2360_v40  ;;  %2540 = vmatpush1.msra.mxu0 %v2517_v28 }
 0xa12   : > { %3325 = vmatpush3.msra.mxu1 %v2360_v40  ;;  %2541 = vmatprep.subr.mxu0 %v2516_v25  ;;  %v2508_v40 = vld [vmem:[%s4297_s20 + $0x88] sm:$0xff] }
 0xa13   : > { %3326 = vmatprep.subr.mxu1 %v2359_v42  ;;  %2542 = vmatpush1.msra.mxu0 %v2515_v20 }
 0xa14   : > { %3327 = vmatpush3.msra.mxu1 %v2359_v42  ;;  %2543 = vmatprep.subr.mxu0 %v2514_v32  ;;  %v2507_v42 = vld [vmem:[%s4297_s20 + $0x80] sm:$0xff] }
 0xa15   : > { %3328 = vmatprep.subr.mxu1 %v2358_v43  ;;  %2544 = vmatpush1.msra.mxu0 %v2513_v29 }
 0xa16   : > { %3329 = vmatpush3.msra.mxu1 %v2358_v43  ;;  %2545 = vmatprep.subr.mxu0 %v2512_v33  ;;  %v2506_v43 = vld [vmem:[%s4297_s20 + $0x78] sm:$0xff] }
 0xa17   : > { %3330 = vmatprep.subr.mxu1 %v2357_v46  ;;  %2546 = vmatpush1.msra.mxu0 %v2511_v34 }
 0xa18   : > { %3331 = vmatpush3.msra.mxu1 %v2357_v46  ;;  %2547 = vmatprep.subr.mxu0 %v2510_v35  ;;  %v2505_v46 = vld [vmem:[%s4297_s20 + $0x70] sm:$0xff] }
 0xa19   : > { %3332 = vmatprep.subr.mxu1 %v2356_v49  ;;  %2548 = vmatpush1.msra.mxu0 %v2509_v37 }
 0xa1a   : > { %3333 = vmatpush3.msra.mxu1 %v2356_v49  ;;  %2549 = vmatprep.subr.mxu0 %v2508_v40  ;;  %v2504_v49 = vld [vmem:[%s4297_s20 + $0x68] sm:$0xff]  ;;  %v2635_v40 = vld [vmem:[%s4299_s22 + $0x98] sm:$0xff] }
 0xa1b   : > { %3334 = vmatprep.subr.mxu1 %v2355_v52  ;;  %2550 = vmatpush1.msra.mxu0 %v2507_v42  ;;  %v2634_v42 = vld [vmem:[%s4299_s22 + $0x90] sm:$0xff] }
 0xa1c   : > { %3335 = vmatpush3.msra.mxu1 %v2355_v52  ;;  %2551 = vmatprep.subr.mxu0 %v2506_v43  ;;  %v2503_v52 = vld [vmem:[%s4297_s20 + $0x60] sm:$0xff]  ;;  %v2618_v43 = vld [vmem:[%s4299_s22 + $0x10] sm:$0xff] }
 0xa1d   : > { %3336 = vmatprep.subr.mxu1 %v2354_v47  ;;  %2552 = vmatpush1.msra.mxu0 %v2505_v46  ;;  %v2633_v46 = vld [vmem:[%s4299_s22 + $0x88] sm:$0xff] }
 0xa1e   : > { %3337 = vmatpush3.msra.mxu1 %v2354_v47  ;;  %v2502_v47 = vld [vmem:[%s4297_s20 + $0x58] sm:$0xff]  ;;  %2553 = vmatprep.subr.mxu0 %v2504_v49  ;;  %v2632_v49 = vld [vmem:[%s4299_s22 + $0x80] sm:$0xff] }
 0xa1f   : > { %3338 = vmatprep.subr.mxu1 %v2353_v50  ;;  %2554 = vmatpush1.msra.mxu0 %v2503_v52  ;;  %v2616_v52 = vld [vmem:[%s4299_s22] sm:$0xff] }
 0xa20   : > { %3339 = vmatpush3.msra.mxu1 %v2353_v50  ;;  %v2501_v50 = vld [vmem:[%s4297_s20 + $0x50] sm:$0xff]  ;;  %2555 = vmatprep.subr.mxu0 %v2502_v47 }
 0xa21   : > { %3340 = vmatprep.subr.mxu1 %v2352_v51  ;;  %2556 = vmatpush1.msra.mxu0 %v2501_v50 }
 0xa22   : > { %3341 = vmatpush3.msra.mxu1 %v2352_v51  ;;  %v2500_v51 = vld [vmem:[%s4297_s20 + $0x48] sm:$0xff] }
 0xa23   : > { %3342 = vmatprep.subr.mxu1 %v2351_v53  ;;  %2557 = vmatprep.subr.mxu0 %v2500_v51 }
 0xa24   : > { %3343 = vmatpush3.msra.mxu1 %v2351_v53  ;;  %v2499_v53 = vld [vmem:[%s4297_s20 + $0x40] sm:$0xff] }
 0xa25   : > { %3344 = vmatprep.subr.mxu1 %v2350_v54  ;;  %2558 = vmatpush1.msra.mxu0 %v2499_v53 }
 0xa26   : > { %3345 = vmatpush3.msra.mxu1 %v2350_v54  ;;  %v2498_v54 = vld [vmem:[%s4297_s20 + $0x38] sm:$0xff] }
 0xa27   : > { %2559 = vmatprep.subr.mxu0 %v2498_v54  ;;  %3161 = vmatprep.subr.mxu1 %v2647_v45 }
 0xac7   : > { %v2238_v55 = vpop.f32.mrf.mxu1 }
 0xac9   : > { %v3308_v56 = vpop.f32.mrf.mxu1 }
 0xaca   : > { %v2496_v56 = vld [vmem:[%s4297_s20 + $0x28] sm:$0xff] }
 0xacb   : > { %v2314_v57 = vpop.f32.mrf.mxu0 }
 0xacc   : > { %v3470_v58 = vpack.i.bf16 %v2314_v57, %v2238_v55  ;;  %v2497_v55 = vld [vmem:[%s4297_s20 + $0x30] sm:$0xff]  ;;  %v2495_v57 = vld [vmem:[%s4297_s20 + $0x20] sm:$0xff] }
 0xacd   : > { %v3313_v59 = vpop.f32.mrf.mxu0  ;;  %2560 = vmatpush1.msra.mxu0 %v2497_v55 }
 0xace   : > { %3471 = vrot.lane.b32.xlu0 %v3470_v58, %s3862_s29  ;;  %v2494_v58 = vld [vmem:[%s4297_s20 + $0x18] sm:$0xff]  ;;  %2561 = vmatprep.subr.mxu0 %v2496_v56  ;;  %v2493_v59 = vld [vmem:[%s4297_s20 + $0x10] sm:$0xff]  ;;  %s4778_s20 = scalar_lea.vmem [#allocation11], %s4271_s6 }
 0xacf   : > { %2562 = vmatpush1.msra.mxu0 %v2495_v57 }
 0xad0   : > { %2563 = vmatprep.subr.mxu0 %v2494_v58 }
 0xad1   : > { %2564 = vmatpush1.msra.mxu0 %v2493_v59 }
 0xad2   : > { %2565 = vmatprep.subr.mxu0 %v2492_v60 }
 0xad3   : > { %2566 = vmatpush1.msra.mxu0 %v2491_v61 }
 0xb40   : > { %v3472_v1 = vpop.permute.xlu0 %3471 }
 0xb41   : > { %v3474_v3 = vunpack.i.h.bf16 %v3472_v1  ;;  %v3473_v4 = vunpack.i.l.bf16 %v3472_v1  ;;  %v2645_v1 = vld [vmem:[%s4299_s22 + $0xe8] sm:$0xff] }
 0xb43   : > { %v2348_v9 = vsel %vm2347_vm4, %v2345_v7, %v3473_v4  ;;  %v2349_v10 = vsel %vm2347_vm4, %v2346_v8, %v3474_v3  ;;  %v2644_v3 = vld [vmem:[%s4299_s22 + $0xe0] sm:$0xff]  ;;  %v2627_v7 = vld [vmem:[%s4299_s22 + $0x58] sm:$0xff]  ;;  %v2642_v8 = vld [vmem:[%s4299_s22 + $0xd0] sm:$0xff] }
 0xb44   : > { %3346 = vmatprep.mubr.f32.mxu1 %v2348_v9  ;;  %v2628_v4 = vld [vmem:[%s4299_s22 + $0x60] sm:$0xff]  ;;  %v2626_v9 = vld [vmem:[%s4299_s22 + $0x50] sm:$0xff] }
 0xb45   : > { %3347 = vmatmul.mubr.f32.vlgmr.msra.gmra.mxu1 %v2349_v10  ;;  %v2641_v10 = vld [vmem:[%s4299_s22 + $0xc8] sm:$0xff] }
 0xb46   : > { %3162 = vmatpush3.msra.mxu1 %v2631_v62 }
 0xb47   : > { %3163 = vmatprep.subr.mxu1 %v2646_v63 }
 0xb48   : > { %3164 = vmatpush3.msra.mxu1 %v2630_v0 }
 0xb49   : > { %3165 = vmatprep.subr.mxu1 %v2645_v1 }
 0xb4a   : > { %3166 = vmatpush3.msra.mxu1 %v2629_v2 }
 0xb4b   : > { %3167 = vmatprep.subr.mxu1 %v2644_v3 }
 0xb4c   : > { %3168 = vmatpush3.msra.mxu1 %v2628_v4 }
 0xb4d   : > { %3169 = vmatprep.subr.mxu1 %v2643_v5 }
 0xb4e   : > { %3170 = vmatpush3.msra.mxu1 %v2627_v7 }
 0xb4f   : > { %3171 = vmatprep.subr.mxu1 %v2642_v8 }
 0xb50   : > { %3172 = vmatpush3.msra.mxu1 %v2626_v9 }
 0xb51   : > { %3173 = vmatprep.subr.mxu1 %v2641_v10 }
 0xc05   : > { %v3348_v11 = vpop.f32.mrf.mxu1 }
 0xc06   : > { %v2445_v12 = vadd.f32 %v3348_v11, %v3079_v48  ;;  %v2640_v11 = vld [vmem:[%s4299_s22 + $0xc0] sm:$0xff] }
 0xc07   : > { %v2439_v44 = vpop.f32.mrf.mxu1 }
 0xc08   : > { %v2440_v13 = vadd.f32 %v3079_v48, %v2439_v44  ;;  %v2449_v14 = vadd.f32 %v2445_v12, %v4369_v36  ;;  %v2625_v48 = vld [vmem:[%s4299_s22 + $0x48] sm:$0xff]  ;;  %v2624_v12 = vld [vmem:[%s4299_s22 + $0x40] sm:$0xff]  ;;  %v2639_v44 = vld [vmem:[%s4299_s22 + $0xb8] sm:$0xff] }
 0xc09   : > { %3174 = vmatpush3.msra.mxu1 %v2625_v48 }
 0xc0a   : > { %2454 = vadd.xlane.f32.xlu0 %v2449_v14  ;;  %v2448_v15 = vadd.f32 %v2440_v13, %v4344_v16  ;;  %3175 = vmatprep.subr.mxu1 %v2640_v11  ;;  %v2623_v13 = vld [vmem:[%s4299_s22 + $0x38] sm:$0xff] }
 0xc0b   : > { %3176 = vmatpush3.msra.mxu1 %v2624_v12 }
 0xc0c   : > { %2452 = vadd.xlane.f32.xlu1 %v2448_v15  ;;  %3177 = vmatprep.subr.mxu1 %v2639_v44 }
 0xc0d   : > { %3178 = vmatpush3.msra.mxu1 %v2623_v13 }
 0xc93   : > { %v2455_v16 = vpop.xlane.xlu0 %2454 }
 0xc94   : > { %v2458_v22 = vmul.f32 0.0078125, %v2455_v16 }
 0xc95   : > { %v2453_v36 = vpop.xlane.xlu1 %2452 }
 0xc96   : > { %v2457_v24 = vmul.f32 0.0078125, %v2453_v36  ;;  %v4599_v27 = vsub.f32 %v2449_v14, %v2458_v22  ;;  %v2638_v14 = vld [vmem:[%s4299_s22 + $0xb0] sm:$0xff] }
 0xc97   : > { %3179 = vmatprep.subr.mxu1 %v2638_v14 }
 0xc98   : > { %v4597_v26 = vsub.f32 %v2448_v15, %v2457_v24  ;;  %v2462_v31 = vmul.f32 %v4599_v27, %v4599_v27  ;;  %v2622_v15 = vld [vmem:[%s4299_s22 + $0x30] sm:$0xff] }
 0xc99   : > { %3180 = vmatpush3.msra.mxu1 %v2622_v15  ;;  %v3080_v24 = vld [vmem:[%s4778_s20] ss:$0 sm:$0xff] }
 0xc9a   : > { %v2461_v30 = vmul.f32 %v4597_v26, %v4597_v26  ;;  %3181 = vmatprep.subr.mxu1 %v2637_v17 }
 0xc9b   : > { %3182 = vmatpush3.msra.mxu1 %v2621_v18 }
 0xc9c   : > { %2463 = vadd.xlane.f32.xlu0 %v2461_v30  ;;  %3183 = vmatprep.subr.mxu1 %v2636_v19 }
 0xc9d   : > { %3184 = vmatpush3.msra.mxu1 %v2620_v21 }
 0xc9e   : > { %3185 = vmatprep.subr.mxu1 %v2635_v40 }
 0xca0   : > { %2465 = vadd.xlane.f32.xlu0 %v2462_v31  ;;  %v3081_v31 = vld [vmem:[%s4779_s8] ss:$0 sm:$0xff] }
 0xd25   : > { %v2464_v23 = vpop.xlane.xlu0 %2463 }
 0xd26   : > { %v2467_v28 = vmul.f32 0.0078125, %v2464_v23 }
 0xd28   : > { %v2469_v25 = vadd.f32 1e-05, %v2467_v28  ;;  %v3083_v28 = vld [vmem:[%s768_s9] ss:$0 sm:$0xff] }
 0xd29   : > { %v2466_v20 = vpop.xlane.xlu0 %2465 }
 0xd2a   : > { %3507 = vrsqrt.f32 %v2469_v25  ;;  %v2468_v16 = vmul.f32 0.0078125, %v2466_v20  ;;  %v3084_v20 = vld [vmem:[%s673_s0] ss:$0 sm:$0xff] }
 0xd2c   : > { %v2470_v36 = vadd.f32 1e-05, %v2468_v16 }
 0xd2e   : > { %3509 = vrsqrt.f32 %v2470_v36 }
 0xd37   : > { %v3508_v22 = vpop.eup %3507 }
 0xd38   : > { %v2473_v30 = vmul.f32 %v3508_v22, %v4597_v26  ;;  %v2619_v26 = vld [vmem:[%s4299_s22 + $0x18] sm:$0xff] }
 0xd39   : > { %3186 = vmatpush3.msra.mxu1 %v2619_v26 }
 0xd3a   : > { %v2481_v32 = vmul.f32 %v3080_v24, %v2473_v30  ;;  %3187 = vmatprep.subr.mxu1 %v2634_v42 }
 0xd3b   : > { %v3510_v29 = vpop.eup %3509  ;;  %3188 = vmatpush3.msra.mxu1 %v2618_v43 }
 0xd3c   : > { %v2489_v33 = vadd.f32 %v3081_v31, %v2481_v32  ;;  %v2474_v34 = vmul.f32 %v3510_v29, %v4599_v27  ;;  %3189 = vmatprep.subr.mxu1 %v2633_v46  ;;  %v2617_v27 = vld [vmem:[%s4299_s22 + $0x8] sm:$0xff] }
 0xd3d   : > { %3190 = vmatpush3.msra.mxu1 %v2617_v27 }
 0xd3e   : > { %2600 = vmatmul.mubr.f32.vlgmr.msra.gmra.mxu0 %v2489_v33  ;;  %v2482_v35 = vmul.f32 %v3080_v24, %v2474_v34  ;;  %3191 = vmatprep.subr.mxu1 %v2632_v49 }
 0xd3f   : > { %2605 = vmatprep.mubr.f32.mxu0 %v3860_v6  ;;  %3192 = vmatpush3.msra.mxu1 %v2616_v52  ;;  %v2523_v6 = vld [vmem:[%s4317_s23] sm:$0x3] }
 0xd40   : > { %v2490_v37 = vadd.f32 %v3081_v31, %v2482_v35  ;;  %v2528_v47 = vrot.slane %v2523_v6, %v831_v39  ;;  %v2532_v50 = vrot.slane %v2523_v6, %v835_v41 }
 0xd42   : > { %2606 = vmatmul.mubr.f32.gmra.mxu0 %v2490_v37 }
 0xdfe   : > { %v2601_v51 = vpop.f32.mrf.mxu0 }
 0xdff   : > { %v2602_v53 = vadd.f32 %v2601_v51, %v2528_v47 }
 0xe00   : > { %v2603_v54 = vpop.f32.mrf.mxu0 }
 0xe01   : > { %v2604_v55 = vadd.f32 %v2603_v54, %v2532_v50  ;;  %v2612_v58 = vmax.f32 %v2602_v53, 0.0 }
 0xe02   : > { %v2607_v56 = vpop.f32.mrf.mxu0 }
 0xe03   : > { %v2613_v57 = vmax.f32 %v2604_v55, 0.0  ;;  %v2608_v59 = vadd.f32 %v2607_v56, %v2528_v47 }
 0xe04   : > { %v2609_v60 = vpop.f32.mrf.mxu0 }
 0xe05   : > { %v2610_v61 = vadd.f32 %v2609_v60, %v2532_v50  ;;  %2719 = vmatprep.mubr.f32.mxu1 %v2613_v57  ;;  %v2614_v62 = vmax.f32 %v2608_v59, 0.0 }
 0xe06   : > { %2720 = vmatmul.mubr.f32.vlgmr.msra.gmra.mxu1 %v2612_v58 }
 0xe07   : > { %v2615_v45 = vmax.f32 %v2610_v61, 0.0 }
 0xe09   : > { %2724 = vmatprep.mubr.f32.mxu1 %v2615_v45 }
 0xe0a   : > { %2725 = vmatmul.mubr.f32.gmra.mxu1 %v2614_v62 }
 0xec6   : > { %v3193_v39 = vpop.f32.mrf.mxu1 }
 0xec8   : > { %v3194_v41 = vpop.f32.mrf.mxu1 }
 0xec9   : > { %v3195_v63 = vadd.f32 %v3194_v41, %v3193_v39 }
 0xeca   : > { %v3196_v0 = vpop.f32.mrf.mxu1 }
 0xecb   : > { %v2722_v1 = vadd.f32 %v3195_v63, %v3082_v38 }
 0xecc   : > { %v3197_v2 = vpop.f32.mrf.mxu1 }
 0xecd   : > { %v3198_v3 = vadd.f32 %v3197_v2, %v3196_v0  ;;  %v2730_v4 = vadd.f32 %v2722_v1, %v2489_v33 }
 0xecf   : > { %v2727_v5 = vadd.f32 %v3198_v3, %v3082_v38  ;;  %2734 = vadd.xlane.f32.xlu1 %v2730_v4 }
 0xed1   : > { %v2731_v7 = vadd.f32 %v2727_v5, %v2490_v37 }
 0xed3   : > { %2736 = vadd.xlane.f32.xlu0 %v2731_v7 }
 0xf58   : > { %v2735_v8 = vpop.xlane.xlu1 %2734 }
 0xf59   : > { %v2738_v9 = vmul.f32 0.0078125, %v2735_v8 }
 0xf5b   : > { %v2740_v10 = vsub.f32 %v2730_v4, %v2738_v9 }
 0xf5c   : > { %v2737_v48 = vpop.xlane.xlu0 %2736 }
 0xf5d   : > { %v2739_v11 = vmul.f32 0.0078125, %v2737_v48  ;;  %v2742_v12 = vmul.f32 %v2740_v10, %v2740_v10 }
 0xf5f   : > { %v2741_v44 = vsub.f32 %v2731_v7, %v2739_v11  ;;  %2744 = vadd.xlane.f32.xlu1 %v2742_v12 }
 0xf61   : > { %v2743_v13 = vmul.f32 %v2741_v44, %v2741_v44 }
 0xf63   : > { %2746 = vadd.xlane.f32.xlu0 %v2743_v13 }
 0xfe8   : > { %v2745_v14 = vpop.xlane.xlu1 %2744 }
 0xfe9   : > { %v2748_v15 = vmul.f32 0.0078125, %v2745_v14 }
 0xfeb   : > { %v2750_v17 = vadd.f32 1e-05, %v2748_v15 }
 0xfec   : > { %v2747_v18 = vpop.xlane.xlu0 %2746 }
 0xfed   : > { %3511 = vrsqrt.f32 %v2750_v17  ;;  %v2749_v19 = vmul.f32 0.0078125, %v2747_v18 }
 0xfef   : > { %v2751_v21 = vadd.f32 1e-05, %v2749_v19 }
 0xff1   : > { %3513 = vrsqrt.f32 %v2751_v21 }
 0xffa   : > { %v3512_v23 = vpop.eup %3511 }
 0xffb   : > { %v2754_v25 = vmul.f32 %v3512_v23, %v2740_v10 }
 0xffd   : > { %v2762_v16 = vmul.f32 %v3083_v28, %v2754_v25 }
 0xffe   : > { %v3514_v36 = vpop.eup %3513 }
 0xfff   : > { %v2770_v22 = vadd.f32 %v3084_v20, %v2762_v16  ;;  %v2755_v24 = vmul.f32 %v3514_v36, %v2741_v44 }
0x1001   : > { %2772 = vst [vmem:[#allocation2] sm:$0xff] %v2770_v22  ;;  %v2763_v30 = vmul.f32 %v3083_v28, %v2755_v24  ;;  %2777 = sbr.rel (%p3085_p12) target bundleno = 4103 (0x1007), region = 116 }
0x1003   : > { %v2771_v31 = vadd.f32 %v3084_v20, %v2763_v30 }
0x1005   : > { %2773 = vst [vmem:[#allocation2 + $0x8] sm:$0xff] %v2771_v31 }
0x1006   : > { %2778 = vst [vmem:[#allocation18] sm:$0xff] %v2770_v22  ;;  %2779 = vst [vmem:[#allocation18 + $0x8] sm:$0xff] %v2771_v31 }
0x1007 PF: > { %p3411_p13 = scmp.eq.s32.totalorder %s4130_s24, 3  ;;  %s3865_s9 = smov [#allocation18]  }
0x1008   : > { %s2786_s6 = sshll.u32 %s3865_s9, 4  ;;  %s2787_s6 = int_to_ptr.vmem [resolvable:$true] %s2786_s6 }
0x1009   : > { %s3765_s0 = scalar_lea.vmem %s2787_s6, 256  ;;  %p3772_p9 = scmp.lt.s32.totalorder %s2787_s6, %s2787_s6 }
0x100a   : > { %p3766_p0 = scmp.ne.s32.totalorder %s2787_s6, %s3765_s0  ;;  %p3773_p6 = scmp.lt.s32.totalorder %s3765_s0, %s3765_s0 }
0x100c   : > { %p3767_p2 = pnand %p3766_p0, %p3411_p13  ;;  %p3774_p1 = por %p3773_p6, %p3772_p9 }
0x100e   : > { %p3768_p8 = pneg %p3767_p2 }
0x1010   : > { %p3775_p3 = pnand %p3774_p1, %p3768_p8 }
0x1012   : > { %3778 = shalt.err (!%p3775_p3)
}
0x1013   : > { %s3866_s30 = smov 128   ;;  %s3867_s23 = smov 8  }
0x1014   : > { %s4782_s28 = sld [smem:[#allocation37_spill]] }
0x101a   : > { %3376 = dma.vmem_to_hbm [thread:$0]  (%p3411_p13), %s2787_s6, 256, %s4782_s28, [#allocation5], %s3866_s30, %s3866_s30, %s3867_s23  }
0x101b   : > { %3826 = dma.done.wait (%p3411_p13), [#allocation5], 256  }
0x101c   : > { %3828 = vsyncadd (%p3411_p13), [#allocation5], 4294967040 }
0x101d PF: > { %s4783_s28 = sld [smem:[#allocation26_spill]]  ;;  %s4786_s25 = smov %s3835_s26 }
0x101e   : > { %s4784_s15 = sld [smem:[#allocation25_spill]] }
0x101f   : > { %s4785_s27 = sld [smem:[#allocation27_spill]] }
0x1023   : > { %p34_p7 = scmp.ge.s32.totalorder %s4783_s28, 6  }
0x1024   : > { %s4787_s26 = smov %s4784_s15 }
0x1025   :  { %36 = sbr.rel (!%p34_p7) target bundleno = 22 (0x16), region = 217 }
0x102a   :  { %2802 = vsyncpa [#allocation4], 1 }
0x102b   :  { %2804 = vsyncpa [#allocation4 + $0x1], 1 }
0x102c   :  { %2805 = vsyncpa [#allocation7], 1 }
0x102d   :  { %2807 = vsyncpa [#allocation7 + $0x1], 1 }
0x102e   :  { %2808 = vsyncpa [#allocation10], 1 }
0x102f   :  { %2810 = vsyncpa [#allocation10 + $0x1], 1 }
0x1030   :  { %2811 = vsyncpa [#allocation13], 1 }
0x1031   :  { %2813 = vsyncpa [#allocation13 + $0x1], 1 }
0x1032   :  { %2814 = vsyncpa [#allocation16], 1 }
0x1033   :  { %2816 = vsyncpa [#allocation16 + $0x1], 1 }
0x1034   :  { %2817 = vsyncpa [#allocation5], 1 }
0x1035   :  { %2819 = vsyncpa [#allocation5 + $0x1], 1 }

</bundles_post_ra>
